<compile_context>
chip_gen: v6e
topology: v6e:2x2x1
jax: 0.10.0
libtpu: 0.0.40
codegen_flags: <defaults>
</compile_context>

<pallas_src>
import functools

import jax
import jax.numpy as jnp
import numpy as np
from jax.experimental import pallas as pl
from jax.experimental.pallas import tpu as pltpu


def _residual_block_kernel(x_ref, w1_ref, b1_ref, w2_ref, b2_ref, vmask_ref,
                           o_ref, xp_ref, yp_ref, *, H, W):
    """Fused conv3x3 -> ReLU -> conv3x3 (+bias, res_scale pre-folded) + identity.

    Layout: one batch element per grid step; channels on sublanes, flattened
    spatial (row-major, zero-bordered, width-padded to W+2) on lanes.

      x_ref     : (C, H*W)          input image, flattened NCHW rows
      w*_ref    : (9, Cout, Cin)    tap-major 3x3 weights (tap k = dy*3+dx)
      b*_ref    : (C, 1)            bias column (broadcast over lanes)
      vmask_ref : (1, H*(W+2))      1.0 on real columns, 0.0 on the 2 wrap cols/row
      o_ref     : (C, H*W)          output (lane-dense)
      xp_ref    : (C, (H+3)*(W+2))  VMEM scratch: zero-padded flattened input
      yp_ref    : (C, (H+3)*(W+2))  VMEM scratch: zero-padded flattened relu(conv1)
    """
    C = x_ref.shape[0]
    P = W + 2            # padded row stride
    LZ = H * P           # flat length of one conv-output slab

    # The 1-px zero border (plus a slack row at the end) exists only in VMEM:
    # zero the scratches, then embed input row h at padded offset (h+1)*P + 1.
    xp_ref[...] = jnp.zeros_like(xp_ref)
    yp_ref[...] = jnp.zeros_like(yp_ref)
    for h in range(H):
        dst = (h + 1) * P + 1
        xp_ref[:, dst:dst + W] = x_ref[:, h * W:(h + 1) * W]

    def conv3x3(src_ref, w_ref, b_ref):
        # Each tap (dy,dx) is one MXU contraction (Cout,Cin) @ (Cin,LZ) over a
        # *contiguous* lane-slice at flat offset dy*P + dx: no per-tap
        # reshape/relayout.  Accumulator is small enough to stay in vregs here;
        # for large spatial tiles it would move to a VMEM scratch.
        acc = jnp.zeros((C, LZ), jnp.float32)
        for dy in range(3):
            for dx in range(3):
                off = dy * P + dx
                acc = acc + jnp.dot(w_ref[dy * 3 + dx],
                                    src_ref[:, off:off + LZ],
                                    preferred_element_type=jnp.float32)
        return acc + b_ref[...]

    # conv1 + bias + ReLU; zero the 2 wrap-around columns per row and drop the
    # result straight into conv2's zero-padded input scratch (interior starts
    # at flat offset P+1).  The intermediate activation never touches HBM.
    y = jnp.maximum(conv3x3(xp_ref, w1_ref, b1_ref), 0.0) * vmask_ref[...]
    yp_ref[:, P + 1:P + 1 + LZ] = y

    # conv2 + bias (res_scale already folded into w2/b2) + residual add.
    z = conv3x3(yp_ref, w2_ref, b2_ref)
    for h in range(H):
        o_ref[:, h * W:(h + 1) * W] = (x_ref[:, h * W:(h + 1) * W] +
                                       z[:, h * P:h * P + W])


def residual_block_nobn(x_nchw, w1, b1, w2, b2, res_scale=1.0):
    """x_nchw: (N, C, H, W); w*: (Cout, Cin, 3, 3) PyTorch OIHW; b*: (C,)."""
    N, C, H, W = x_nchw.shape
    P = W + 2
    LZ = H * P
    LPAD = (H + 3) * P   # one slack zero-row keeps the last tap slices in bounds

    # One-time parameter relayout (O(C^2), off the activation hot path):
    # OIHW -> tap-major (9, Cout, Cin).  res_scale is folded into conv2's
    # weights/bias, so it stays traced (no recompile per value).
    rs = jnp.asarray(res_scale, jnp.float32)
    w1_t = jnp.transpose(w1, (2, 3, 0, 1)).reshape(9, C, C).astype(jnp.float32)
    w2_t = jnp.transpose(w2, (2, 3, 0, 1)).reshape(9, C, C).astype(jnp.float32) * rs
    b1_c = b1.reshape(C, 1).astype(jnp.float32)
    b2_c = b2.reshape(C, 1).astype(jnp.float32) * rs

    # Static mask of "real" columns in the width-padded flat layout.
    vmask = jnp.asarray((np.arange(LZ) % P < W).astype(np.float32)).reshape(1, LZ)

    # NCHW consumed directly; (N,C,H,W) <-> (N,C,H*W) reshapes are free
    # metadata ops (no NHWC transpose HBM passes) and make the blocks
    # lane-dense (last dim = H*W).
    x_flat = x_nchw.reshape(N, C, H * W).astype(jnp.float32)

    kernel = functools.partial(_residual_block_kernel, H=H, W=W)
    out_flat = pl.pallas_call(
        kernel,
        out_shape=jax.ShapeDtypeStruct((N, C, H * W), jnp.float32),
        grid=(N,),
        in_specs=[
            pl.BlockSpec((None, C, H * W), lambda n: (n, 0, 0)),
            pl.BlockSpec((9, C, C), lambda n: (0, 0, 0)),
            pl.BlockSpec((C, 1), lambda n: (0, 0)),
            pl.BlockSpec((9, C, C), lambda n: (0, 0, 0)),
            pl.BlockSpec((C, 1), lambda n: (0, 0)),
            pl.BlockSpec((1, LZ), lambda n: (0, 0)),
        ],
        out_specs=pl.BlockSpec((None, C, H * W), lambda n: (n, 0, 0)),
        scratch_shapes=[
            pltpu.VMEM((C, LPAD), jnp.float32),   # padded flattened input
            pltpu.VMEM((C, LPAD), jnp.float32),   # padded flattened relu(conv1)
        ],
        compiler_params=pltpu.CompilerParams(
            dimension_semantics=("parallel",),        # N images -> both TCs on v7x
            vmem_limit_bytes=48 * 1024 * 1024),       # headroom for bigger tiles
    )(x_flat, w1_t, b1_c, w2_t, b2_c, vmask)

    return out_flat.reshape(N, C, H, W)


if __name__ == "__main__":
    key = jax.random.PRNGKey(0)
    N, C, H, W = 2, 4, 16, 16
    k_x, k_w1, k_w2 = jax.random.split(key, 3)

    x = jax.random.normal(k_x, (N, C, H, W), jnp.float32)

    # Deterministic init matching default_init_weights semantics:
    # kaiming_normal_ (fan_in = Cin*3*3, gain=sqrt(2)) scaled by 0.1, bias = 0.
    fan_in = C * 3 * 3
    std = (2.0 / fan_in) ** 0.5
    w1 = jax.random.normal(k_w1, (C, C, 3, 3), jnp.float32) * std * 0.1
    w2 = jax.random.normal(k_w2, (C, C, 3, 3), jnp.float32) * std * 0.1
    b1 = jnp.zeros((C,), jnp.float32)
    b2 = jnp.zeros((C,), jnp.float32)
    res_scale = 1.0

    out = residual_block_nobn(x, w1, b1, w2, b2, res_scale)
    out = jax.block_until_ready(out)

    # Pure-JAX reference (NCHW, same as the PyTorch forward).
    def conv_ref(xx, ww, bb):
        y = jax.lax.conv_general_dilated(
            xx, ww, window_strides=(1, 1), padding="SAME",
            dimension_numbers=("NCHW", "OIHW", "NCHW"))
        return y + bb.reshape(1, C, 1, 1)

    ref = x + conv_ref(jnp.maximum(conv_ref(x, w1, b1), 0.0), w2, b2) * res_scale

    max_err = float(jnp.max(jnp.abs(out - ref)))
    assert jnp.allclose(out, ref, atol=1e-4, rtol=1e-4), f"max_err={max_err}"
    print("KERNEL_OK")
</pallas_src>

<mosaic_0001>
module attributes {stable_mosaic.version = 11 : i64} {
  func.func @_residual_block_kernel(%arg0: i32, %arg1: memref<1x4x256xf32, #tpu.memory_space<vmem>>, %arg2: memref<9x4x4xf32, #tpu.memory_space<vmem>>, %arg3: memref<4x1xf32, #tpu.memory_space<vmem>>, %arg4: memref<9x4x4xf32, #tpu.memory_space<vmem>>, %arg5: memref<4x1xf32, #tpu.memory_space<vmem>>, %arg6: memref<1x288xf32, #tpu.memory_space<vmem>>, %arg7: memref<1x4x256xf32, #tpu.memory_space<vmem>>, %arg8: memref<4x342xf32, #tpu.memory_space<vmem>>, %arg9: memref<4x342xf32, #tpu.memory_space<vmem>>) attributes {dimension_semantics = [#tpu.dimension_semantics<parallel>], iteration_bounds = array<i64: 2>, scalar_prefetch = 0 : i64, scratch_operands = 2 : i64, tpu.core_type = #tpu.core_type<tc>, window_params = [{transform_indices = @transform_0, window_bounds = array<i64: 1, 4, 256>}, {pipeline_mode = #tpu.pipeline_mode<synchronous>, transform_indices = @transform_1, window_bounds = array<i64: 9, 4, 4>}, {pipeline_mode = #tpu.pipeline_mode<synchronous>, transform_indices = @transform_2, window_bounds = array<i64: 4, 1>}, {pipeline_mode = #tpu.pipeline_mode<synchronous>, transform_indices = @transform_3, window_bounds = array<i64: 9, 4, 4>}, {pipeline_mode = #tpu.pipeline_mode<synchronous>, transform_indices = @transform_4, window_bounds = array<i64: 4, 1>}, {pipeline_mode = #tpu.pipeline_mode<synchronous>, transform_indices = @transform_5, window_bounds = array<i64: 1, 288>}, {transform_indices = @transform_6, window_bounds = array<i64: 1, 4, 256>}]} {
    %cst = arith.constant 0.000000e+00 : f32
    %0 = vector.broadcast %cst : f32 to vector<4x342xf32>
    %c0 = arith.constant 0 : index
    %c0_0 = arith.constant 0 : index
    %1 = vector.load %arg8[%c0, %c0_0] : memref<4x342xf32, #tpu.memory_space<vmem>>, vector<4x342xf32>
    tpu.vector_store %arg8[%c0, %c0_0], %0 {strides = array<i32>} : memref<4x342xf32, #tpu.memory_space<vmem>>, vector<4x342xf32>,
    %cst_1 = arith.constant 0.000000e+00 : f32
    %2 = vector.broadcast %cst_1 : f32 to vector<4x342xf32>
    %c0_2 = arith.constant 0 : index
    %c0_3 = arith.constant 0 : index
    %3 = vector.load %arg9[%c0_2, %c0_3] : memref<4x342xf32, #tpu.memory_space<vmem>>, vector<4x342xf32>
    tpu.vector_store %arg9[%c0_2, %c0_3], %2 {strides = array<i32>} : memref<4x342xf32, #tpu.memory_space<vmem>>, vector<4x342xf32>,
    %c0_4 = arith.constant 0 : index
    %c0_5 = arith.constant 0 : index
    %c0_6 = arith.constant 0 : index
    %4 = vector.load %arg1[%c0_4, %c0_5, %c0_6] : memref<1x4x256xf32, #tpu.memory_space<vmem>>, vector<1x4x16xf32>
    %5 = vector.shape_cast %4 : vector<1x4x16xf32> to vector<4x16xf32>
    %c0_7 = arith.constant 0 : index
    %c19 = arith.constant 19 : index
    %6 = vector.load %arg8[%c0_7, %c19] : memref<4x342xf32, #tpu.memory_space<vmem>>, vector<4x16xf32>
    tpu.vector_store %arg8[%c0_7, %c19], %5 {strides = array<i32>} : memref<4x342xf32, #tpu.memory_space<vmem>>, vector<4x16xf32>,
    %c0_8 = arith.constant 0 : index
    %c0_9 = arith.constant 0 : index
    %c16 = arith.constant 16 : index
    %7 = vector.load %arg1[%c0_8, %c0_9, %c16] : memref<1x4x256xf32, #tpu.memory_space<vmem>>, vector<1x4x16xf32>
    %8 = vector.shape_cast %7 : vector<1x4x16xf32> to vector<4x16xf32>
    %c0_10 = arith.constant 0 : index
    %c37 = arith.constant 37 : index
    %9 = vector.load %arg8[%c0_10, %c37] : memref<4x342xf32, #tpu.memory_space<vmem>>, vector<4x16xf32>
    tpu.vector_store %arg8[%c0_10, %c37], %8 {strides = array<i32>} : memref<4x342xf32, #tpu.memory_space<vmem>>, vector<4x16xf32>,
    %c0_11 = arith.constant 0 : index
    %c0_12 = arith.constant 0 : index
    %c32 = arith.constant 32 : index
    %10 = vector.load %arg1[%c0_11, %c0_12, %c32] : memref<1x4x256xf32, #tpu.memory_space<vmem>>, vector<1x4x16xf32>
    %11 = vector.shape_cast %10 : vector<1x4x16xf32> to vector<4x16xf32>
    %c0_13 = arith.constant 0 : index
    %c55 = arith.constant 55 : index
    %12 = vector.load %arg8[%c0_13, %c55] : memref<4x342xf32, #tpu.memory_space<vmem>>, vector<4x16xf32>
    tpu.vector_store %arg8[%c0_13, %c55], %11 {strides = array<i32>} : memref<4x342xf32, #tpu.memory_space<vmem>>, vector<4x16xf32>,
    %c0_14 = arith.constant 0 : index
    %c0_15 = arith.constant 0 : index
    %c48 = arith.constant 48 : index
    %13 = vector.load %arg1[%c0_14, %c0_15, %c48] : memref<1x4x256xf32, #tpu.memory_space<vmem>>, vector<1x4x16xf32>
    %14 = vector.shape_cast %13 : vector<1x4x16xf32> to vector<4x16xf32>
    %c0_16 = arith.constant 0 : index
    %c73 = arith.constant 73 : index
    %15 = vector.load %arg8[%c0_16, %c73] : memref<4x342xf32, #tpu.memory_space<vmem>>, vector<4x16xf32>
    tpu.vector_store %arg8[%c0_16, %c73], %14 {strides = array<i32>} : memref<4x342xf32, #tpu.memory_space<vmem>>, vector<4x16xf32>,
    %c0_17 = arith.constant 0 : index
    %c0_18 = arith.constant 0 : index
    %c64 = arith.constant 64 : index
    %16 = vector.load %arg1[%c0_17, %c0_18, %c64] : memref<1x4x256xf32, #tpu.memory_space<vmem>>, vector<1x4x16xf32>
    %17 = vector.shape_cast %16 : vector<1x4x16xf32> to vector<4x16xf32>
    %c0_19 = arith.constant 0 : index
    %c91 = arith.constant 91 : index
    %18 = vector.load %arg8[%c0_19, %c91] : memref<4x342xf32, #tpu.memory_space<vmem>>, vector<4x16xf32>
    tpu.vector_store %arg8[%c0_19, %c91], %17 {strides = array<i32>} : memref<4x342xf32, #tpu.memory_space<vmem>>, vector<4x16xf32>,
    %c0_20 = arith.constant 0 : index
    %c0_21 = arith.constant 0 : index
    %c80 = arith.constant 80 : index
    %19 = vector.load %arg1[%c0_20, %c0_21, %c80] : memref<1x4x256xf32, #tpu.memory_space<vmem>>, vector<1x4x16xf32>
    %20 = vector.shape_cast %19 : vector<1x4x16xf32> to vector<4x16xf32>
    %c0_22 = arith.constant 0 : index
    %c109 = arith.constant 109 : index
    %21 = vector.load %arg8[%c0_22, %c109] : memref<4x342xf32, #tpu.memory_space<vmem>>, vector<4x16xf32>
    tpu.vector_store %arg8[%c0_22, %c109], %20 {strides = array<i32>} : memref<4x342xf32, #tpu.memory_space<vmem>>, vector<4x16xf32>,
    %c0_23 = arith.constant 0 : index
    %c0_24 = arith.constant 0 : index
    %c96 = arith.constant 96 : index
    %22 = vector.load %arg1[%c0_23, %c0_24, %c96] : memref<1x4x256xf32, #tpu.memory_space<vmem>>, vector<1x4x16xf32>
    %23 = vector.shape_cast %22 : vector<1x4x16xf32> to vector<4x16xf32>
    %c0_25 = arith.constant 0 : index
    %c127 = arith.constant 127 : index
    %24 = vector.load %arg8[%c0_25, %c127] : memref<4x342xf32, #tpu.memory_space<vmem>>, vector<4x16xf32>
    tpu.vector_store %arg8[%c0_25, %c127], %23 {strides = array<i32>} : memref<4x342xf32, #tpu.memory_space<vmem>>, vector<4x16xf32>,
    %c0_26 = arith.constant 0 : index
    %c0_27 = arith.constant 0 : index
    %c112 = arith.constant 112 : index
    %25 = vector.load %arg1[%c0_26, %c0_27, %c112] : memref<1x4x256xf32, #tpu.memory_space<vmem>>, vector<1x4x16xf32>
    %26 = vector.shape_cast %25 : vector<1x4x16xf32> to vector<4x16xf32>
    %c0_28 = arith.constant 0 : index
    %c145 = arith.constant 145 : index
    %27 = vector.load %arg8[%c0_28, %c145] : memref<4x342xf32, #tpu.memory_space<vmem>>, vector<4x16xf32>
    tpu.vector_store %arg8[%c0_28, %c145], %26 {strides = array<i32>} : memref<4x342xf32, #tpu.memory_space<vmem>>, vector<4x16xf32>,
    %c0_29 = arith.constant 0 : index
    %c0_30 = arith.constant 0 : index
    %c128 = arith.constant 128 : index
    %28 = vector.load %arg1[%c0_29, %c0_30, %c128] : memref<1x4x256xf32, #tpu.memory_space<vmem>>, vector<1x4x16xf32>
    %29 = vector.shape_cast %28 : vector<1x4x16xf32> to vector<4x16xf32>
    %c0_31 = arith.constant 0 : index
    %c163 = arith.constant 163 : index
    %30 = vector.load %arg8[%c0_31, %c163] : memref<4x342xf32, #tpu.memory_space<vmem>>, vector<4x16xf32>
    tpu.vector_store %arg8[%c0_31, %c163], %29 {strides = array<i32>} : memref<4x342xf32, #tpu.memory_space<vmem>>, vector<4x16xf32>,
    %c0_32 = arith.constant 0 : index
    %c0_33 = arith.constant 0 : index
    %c144 = arith.constant 144 : index
    %31 = vector.load %arg1[%c0_32, %c0_33, %c144] : memref<1x4x256xf32, #tpu.memory_space<vmem>>, vector<1x4x16xf32>
    %32 = vector.shape_cast %31 : vector<1x4x16xf32> to vector<4x16xf32>
    %c0_34 = arith.constant 0 : index
    %c181 = arith.constant 181 : index
    %33 = vector.load %arg8[%c0_34, %c181] : memref<4x342xf32, #tpu.memory_space<vmem>>, vector<4x16xf32>
    tpu.vector_store %arg8[%c0_34, %c181], %32 {strides = array<i32>} : memref<4x342xf32, #tpu.memory_space<vmem>>, vector<4x16xf32>,
    %c0_35 = arith.constant 0 : index
    %c0_36 = arith.constant 0 : index
    %c160 = arith.constant 160 : index
    %34 = vector.load %arg1[%c0_35, %c0_36, %c160] : memref<1x4x256xf32, #tpu.memory_space<vmem>>, vector<1x4x16xf32>
    %35 = vector.shape_cast %34 : vector<1x4x16xf32> to vector<4x16xf32>
    %c0_37 = arith.constant 0 : index
    %c199 = arith.constant 199 : index
    %36 = vector.load %arg8[%c0_37, %c199] : memref<4x342xf32, #tpu.memory_space<vmem>>, vector<4x16xf32>
    tpu.vector_store %arg8[%c0_37, %c199], %35 {strides = array<i32>} : memref<4x342xf32, #tpu.memory_space<vmem>>, vector<4x16xf32>,
    %c0_38 = arith.constant 0 : index
    %c0_39 = arith.constant 0 : index
    %c176 = arith.constant 176 : index
    %37 = vector.load %arg1[%c0_38, %c0_39, %c176] : memref<1x4x256xf32, #tpu.memory_space<vmem>>, vector<1x4x16xf32>
    %38 = vector.shape_cast %37 : vector<1x4x16xf32> to vector<4x16xf32>
    %c0_40 = arith.constant 0 : index
    %c217 = arith.constant 217 : index
    %39 = vector.load %arg8[%c0_40, %c217] : memref<4x342xf32, #tpu.memory_space<vmem>>, vector<4x16xf32>
    tpu.vector_store %arg8[%c0_40, %c217], %38 {strides = array<i32>} : memref<4x342xf32, #tpu.memory_space<vmem>>, vector<4x16xf32>,
    %c0_41 = arith.constant 0 : index
    %c0_42 = arith.constant 0 : index
    %c192 = arith.constant 192 : index
    %40 = vector.load %arg1[%c0_41, %c0_42, %c192] : memref<1x4x256xf32, #tpu.memory_space<vmem>>, vector<1x4x16xf32>
    %41 = vector.shape_cast %40 : vector<1x4x16xf32> to vector<4x16xf32>
    %c0_43 = arith.constant 0 : index
    %c235 = arith.constant 235 : index
    %42 = vector.load %arg8[%c0_43, %c235] : memref<4x342xf32, #tpu.memory_space<vmem>>, vector<4x16xf32>
    tpu.vector_store %arg8[%c0_43, %c235], %41 {strides = array<i32>} : memref<4x342xf32, #tpu.memory_space<vmem>>, vector<4x16xf32>,
    %c0_44 = arith.constant 0 : index
    %c0_45 = arith.constant 0 : index
    %c208 = arith.constant 208 : index
    %43 = vector.load %arg1[%c0_44, %c0_45, %c208] : memref<1x4x256xf32, #tpu.memory_space<vmem>>, vector<1x4x16xf32>
    %44 = vector.shape_cast %43 : vector<1x4x16xf32> to vector<4x16xf32>
    %c0_46 = arith.constant 0 : index
    %c253 = arith.constant 253 : index
    %45 = vector.load %arg8[%c0_46, %c253] : memref<4x342xf32, #tpu.memory_space<vmem>>, vector<4x16xf32>
    tpu.vector_store %arg8[%c0_46, %c253], %44 {strides = array<i32>} : memref<4x342xf32, #tpu.memory_space<vmem>>, vector<4x16xf32>,
    %c0_47 = arith.constant 0 : index
    %c0_48 = arith.constant 0 : index
    %c224 = arith.constant 224 : index
    %46 = vector.load %arg1[%c0_47, %c0_48, %c224] : memref<1x4x256xf32, #tpu.memory_space<vmem>>, vector<1x4x16xf32>
    %47 = vector.shape_cast %46 : vector<1x4x16xf32> to vector<4x16xf32>
    %c0_49 = arith.constant 0 : index
    %c271 = arith.constant 271 : index
    %48 = vector.load %arg8[%c0_49, %c271] : memref<4x342xf32, #tpu.memory_space<vmem>>, vector<4x16xf32>
    tpu.vector_store %arg8[%c0_49, %c271], %47 {strides = array<i32>} : memref<4x342xf32, #tpu.memory_space<vmem>>, vector<4x16xf32>,
    %c0_50 = arith.constant 0 : index
    %c0_51 = arith.constant 0 : index
    %c240 = arith.constant 240 : index
    %49 = vector.load %arg1[%c0_50, %c0_51, %c240] : memref<1x4x256xf32, #tpu.memory_space<vmem>>, vector<1x4x16xf32>
    %50 = vector.shape_cast %49 : vector<1x4x16xf32> to vector<4x16xf32>
    %c0_52 = arith.constant 0 : index
    %c289 = arith.constant 289 : index
    %51 = vector.load %arg8[%c0_52, %c289] : memref<4x342xf32, #tpu.memory_space<vmem>>, vector<4x16xf32>
    tpu.vector_store %arg8[%c0_52, %c289], %50 {strides = array<i32>} : memref<4x342xf32, #tpu.memory_space<vmem>>, vector<4x16xf32>,
    %cst_53 = arith.constant 0.000000e+00 : f32
    %52 = vector.broadcast %cst_53 : f32 to vector<4x288xf32>
    %c0_54 = arith.constant 0 : index
    %c0_55 = arith.constant 0 : index
    %c0_56 = arith.constant 0 : index
    %53 = vector.load %arg2[%c0_54, %c0_55, %c0_56] : memref<9x4x4xf32, #tpu.memory_space<vmem>>, vector<1x4x4xf32>
    %54 = vector.shape_cast %53 : vector<1x4x4xf32> to vector<4x4xf32>
    %c0_57 = arith.constant 0 : index
    %c0_58 = arith.constant 0 : index
    %55 = vector.load %arg8[%c0_57, %c0_58] : memref<4x342xf32, #tpu.memory_space<vmem>>, vector<4x288xf32>
    %cst_59 = arith.constant dense<0.000000e+00> : vector<4x288xf32>
    %56 = tpu.matmul %54, %55, %cst_59 {dimension_numbers = #tpu.dot_dimension_numbers<[1], [0], [0], [1], [0, 0, 1, 1], [], []>} : vector<4x4xf32>, vector<4x288xf32>, vector<4x288xf32> -> vector<4x288xf32>
    %57 = arith.addf %52, %56 : vector<4x288xf32>
    %c1 = arith.constant 1 : index
    %c0_60 = arith.constant 0 : index
    %c0_61 = arith.constant 0 : index
    %58 = vector.load %arg2[%c1, %c0_60, %c0_61] : memref<9x4x4xf32, #tpu.memory_space<vmem>>, vector<1x4x4xf32>
    %59 = vector.shape_cast %58 : vector<1x4x4xf32> to vector<4x4xf32>
    %c0_62 = arith.constant 0 : index
    %c1_63 = arith.constant 1 : index
    %60 = vector.load %arg8[%c0_62, %c1_63] : memref<4x342xf32, #tpu.memory_space<vmem>>, vector<4x288xf32>
    %cst_64 = arith.constant dense<0.000000e+00> : vector<4x288xf32>
    %61 = tpu.matmul %59, %60, %cst_64 {dimension_numbers = #tpu.dot_dimension_numbers<[1], [0], [0], [1], [0, 0, 1, 1], [], []>} : vector<4x4xf32>, vector<4x288xf32>, vector<4x288xf32> -> vector<4x288xf32>
    %62 = arith.addf %57, %61 : vector<4x288xf32>
    %c2 = arith.constant 2 : index
    %c0_65 = arith.constant 0 : index
    %c0_66 = arith.constant 0 : index
    %63 = vector.load %arg2[%c2, %c0_65, %c0_66] : memref<9x4x4xf32, #tpu.memory_space<vmem>>, vector<1x4x4xf32>
    %64 = vector.shape_cast %63 : vector<1x4x4xf32> to vector<4x4xf32>
    %c0_67 = arith.constant 0 : index
    %c2_68 = arith.constant 2 : index
    %65 = vector.load %arg8[%c0_67, %c2_68] : memref<4x342xf32, #tpu.memory_space<vmem>>, vector<4x288xf32>
    %cst_69 = arith.constant dense<0.000000e+00> : vector<4x288xf32>
    %66 = tpu.matmul %64, %65, %cst_69 {dimension_numbers = #tpu.dot_dimension_numbers<[1], [0], [0], [1], [0, 0, 1, 1], [], []>} : vector<4x4xf32>, vector<4x288xf32>, vector<4x288xf32> -> vector<4x288xf32>
    %67 = arith.addf %62, %66 : vector<4x288xf32>
    %c3 = arith.constant 3 : index
    %c0_70 = arith.constant 0 : index
    %c0_71 = arith.constant 0 : index
    %68 = vector.load %arg2[%c3, %c0_70, %c0_71] : memref<9x4x4xf32, #tpu.memory_space<vmem>>, vector<1x4x4xf32>
    %69 = vector.shape_cast %68 : vector<1x4x4xf32> to vector<4x4xf32>
    %c0_72 = arith.constant 0 : index
    %c18 = arith.constant 18 : index
    %70 = vector.load %arg8[%c0_72, %c18] : memref<4x342xf32, #tpu.memory_space<vmem>>, vector<4x288xf32>
    %cst_73 = arith.constant dense<0.000000e+00> : vector<4x288xf32>
    %71 = tpu.matmul %69, %70, %cst_73 {dimension_numbers = #tpu.dot_dimension_numbers<[1], [0], [0], [1], [0, 0, 1, 1], [], []>} : vector<4x4xf32>, vector<4x288xf32>, vector<4x288xf32> -> vector<4x288xf32>
    %72 = arith.addf %67, %71 : vector<4x288xf32>
    %c4 = arith.constant 4 : index
    %c0_74 = arith.constant 0 : index
    %c0_75 = arith.constant 0 : index
    %73 = vector.load %arg2[%c4, %c0_74, %c0_75] : memref<9x4x4xf32, #tpu.memory_space<vmem>>, vector<1x4x4xf32>
    %74 = vector.shape_cast %73 : vector<1x4x4xf32> to vector<4x4xf32>
    %c0_76 = arith.constant 0 : index
    %c19_77 = arith.constant 19 : index
    %75 = vector.load %arg8[%c0_76, %c19_77] : memref<4x342xf32, #tpu.memory_space<vmem>>, vector<4x288xf32>
    %cst_78 = arith.constant dense<0.000000e+00> : vector<4x288xf32>
    %76 = tpu.matmul %74, %75, %cst_78 {dimension_numbers = #tpu.dot_dimension_numbers<[1], [0], [0], [1], [0, 0, 1, 1], [], []>} : vector<4x4xf32>, vector<4x288xf32>, vector<4x288xf32> -> vector<4x288xf32>
    %77 = arith.addf %72, %76 : vector<4x288xf32>
    %c5 = arith.constant 5 : index
    %c0_79 = arith.constant 0 : index
    %c0_80 = arith.constant 0 : index
    %78 = vector.load %arg2[%c5, %c0_79, %c0_80] : memref<9x4x4xf32, #tpu.memory_space<vmem>>, vector<1x4x4xf32>
    %79 = vector.shape_cast %78 : vector<1x4x4xf32> to vector<4x4xf32>
    %c0_81 = arith.constant 0 : index
    %c20 = arith.constant 20 : index
    %80 = vector.load %arg8[%c0_81, %c20] : memref<4x342xf32, #tpu.memory_space<vmem>>, vector<4x288xf32>
    %cst_82 = arith.constant dense<0.000000e+00> : vector<4x288xf32>
    %81 = tpu.matmul %79, %80, %cst_82 {dimension_numbers = #tpu.dot_dimension_numbers<[1], [0], [0], [1], [0, 0, 1, 1], [], []>} : vector<4x4xf32>, vector<4x288xf32>, vector<4x288xf32> -> vector<4x288xf32>
    %82 = arith.addf %77, %81 : vector<4x288xf32>
    %c6 = arith.constant 6 : index
    %c0_83 = arith.constant 0 : index
    %c0_84 = arith.constant 0 : index
    %83 = vector.load %arg2[%c6, %c0_83, %c0_84] : memref<9x4x4xf32, #tpu.memory_space<vmem>>, vector<1x4x4xf32>
    %84 = vector.shape_cast %83 : vector<1x4x4xf32> to vector<4x4xf32>
    %c0_85 = arith.constant 0 : index
    %c36 = arith.constant 36 : index
    %85 = vector.load %arg8[%c0_85, %c36] : memref<4x342xf32, #tpu.memory_space<vmem>>, vector<4x288xf32>
    %cst_86 = arith.constant dense<0.000000e+00> : vector<4x288xf32>
    %86 = tpu.matmul %84, %85, %cst_86 {dimension_numbers = #tpu.dot_dimension_numbers<[1], [0], [0], [1], [0, 0, 1, 1], [], []>} : vector<4x4xf32>, vector<4x288xf32>, vector<4x288xf32> -> vector<4x288xf32>
    %87 = arith.addf %82, %86 : vector<4x288xf32>
    %c7 = arith.constant 7 : index
    %c0_87 = arith.constant 0 : index
    %c0_88 = arith.constant 0 : index
    %88 = vector.load %arg2[%c7, %c0_87, %c0_88] : memref<9x4x4xf32, #tpu.memory_space<vmem>>, vector<1x4x4xf32>
    %89 = vector.shape_cast %88 : vector<1x4x4xf32> to vector<4x4xf32>
    %c0_89 = arith.constant 0 : index
    %c37_90 = arith.constant 37 : index
    %90 = vector.load %arg8[%c0_89, %c37_90] : memref<4x342xf32, #tpu.memory_space<vmem>>, vector<4x288xf32>
    %cst_91 = arith.constant dense<0.000000e+00> : vector<4x288xf32>
    %91 = tpu.matmul %89, %90, %cst_91 {dimension_numbers = #tpu.dot_dimension_numbers<[1], [0], [0], [1], [0, 0, 1, 1], [], []>} : vector<4x4xf32>, vector<4x288xf32>, vector<4x288xf32> -> vector<4x288xf32>
    %92 = arith.addf %87, %91 : vector<4x288xf32>
    %c8 = arith.constant 8 : index
    %c0_92 = arith.constant 0 : index
    %c0_93 = arith.constant 0 : index
    %93 = vector.load %arg2[%c8, %c0_92, %c0_93] : memref<9x4x4xf32, #tpu.memory_space<vmem>>, vector<1x4x4xf32>
    %94 = vector.shape_cast %93 : vector<1x4x4xf32> to vector<4x4xf32>
    %c0_94 = arith.constant 0 : index
    %c38 = arith.constant 38 : index
    %95 = vector.load %arg8[%c0_94, %c38] : memref<4x342xf32, #tpu.memory_space<vmem>>, vector<4x288xf32>
    %cst_95 = arith.constant dense<0.000000e+00> : vector<4x288xf32>
    %96 = tpu.matmul %94, %95, %cst_95 {dimension_numbers = #tpu.dot_dimension_numbers<[1], [0], [0], [1], [0, 0, 1, 1], [], []>} : vector<4x4xf32>, vector<4x288xf32>, vector<4x288xf32> -> vector<4x288xf32>
    %97 = arith.addf %92, %96 : vector<4x288xf32>
    %c0_96 = arith.constant 0 : index
    %c0_97 = arith.constant 0 : index
    %98 = vector.load %arg3[%c0_96, %c0_97] : memref<4x1xf32, #tpu.memory_space<vmem>>, vector<4x1xf32>
    %99 = vector.broadcast %98 : vector<4x1xf32> to vector<4x288xf32>
    %100 = arith.addf %97, %99 : vector<4x288xf32>
    %cst_98 = arith.constant 0.000000e+00 : f32
    %101 = vector.broadcast %cst_98 : f32 to vector<4x288xf32>
    %102 = arith.maximumf %100, %101 : vector<4x288xf32>
    %c0_99 = arith.constant 0 : index
    %c0_100 = arith.constant 0 : index
    %103 = vector.load %arg6[%c0_99, %c0_100] : memref<1x288xf32, #tpu.memory_space<vmem>>, vector<1x288xf32>
    %104 = vector.broadcast %103 : vector<1x288xf32> to vector<4x288xf32>
    %105 = arith.mulf %102, %104 : vector<4x288xf32>
    %c0_101 = arith.constant 0 : index
    %c19_102 = arith.constant 19 : index
    %106 = vector.load %arg9[%c0_101, %c19_102] : memref<4x342xf32, #tpu.memory_space<vmem>>, vector<4x288xf32>
    tpu.vector_store %arg9[%c0_101, %c19_102], %105 {strides = array<i32>} : memref<4x342xf32, #tpu.memory_space<vmem>>, vector<4x288xf32>,
    %cst_103 = arith.constant 0.000000e+00 : f32
    %107 = vector.broadcast %cst_103 : f32 to vector<4x288xf32>
    %c0_104 = arith.constant 0 : index
    %c0_105 = arith.constant 0 : index
    %c0_106 = arith.constant 0 : index
    %108 = vector.load %arg4[%c0_104, %c0_105, %c0_106] : memref<9x4x4xf32, #tpu.memory_space<vmem>>, vector<1x4x4xf32>
    %109 = vector.shape_cast %108 : vector<1x4x4xf32> to vector<4x4xf32>
    %c0_107 = arith.constant 0 : index
    %c0_108 = arith.constant 0 : index
    %110 = vector.load %arg9[%c0_107, %c0_108] : memref<4x342xf32, #tpu.memory_space<vmem>>, vector<4x288xf32>
    %cst_109 = arith.constant dense<0.000000e+00> : vector<4x288xf32>
    %111 = tpu.matmul %109, %110, %cst_109 {dimension_numbers = #tpu.dot_dimension_numbers<[1], [0], [0], [1], [0, 0, 1, 1], [], []>} : vector<4x4xf32>, vector<4x288xf32>, vector<4x288xf32> -> vector<4x288xf32>
    %112 = arith.addf %107, %111 : vector<4x288xf32>
    %c1_110 = arith.constant 1 : index
    %c0_111 = arith.constant 0 : index
    %c0_112 = arith.constant 0 : index
    %113 = vector.load %arg4[%c1_110, %c0_111, %c0_112] : memref<9x4x4xf32, #tpu.memory_space<vmem>>, vector<1x4x4xf32>
    %114 = vector.shape_cast %113 : vector<1x4x4xf32> to vector<4x4xf32>
    %c0_113 = arith.constant 0 : index
    %c1_114 = arith.constant 1 : index
    %115 = vector.load %arg9[%c0_113, %c1_114] : memref<4x342xf32, #tpu.memory_space<vmem>>, vector<4x288xf32>
    %cst_115 = arith.constant dense<0.000000e+00> : vector<4x288xf32>
    %116 = tpu.matmul %114, %115, %cst_115 {dimension_numbers = #tpu.dot_dimension_numbers<[1], [0], [0], [1], [0, 0, 1, 1], [], []>} : vector<4x4xf32>, vector<4x288xf32>, vector<4x288xf32> -> vector<4x288xf32>
    %117 = arith.addf %112, %116 : vector<4x288xf32>
    %c2_116 = arith.constant 2 : index
    %c0_117 = arith.constant 0 : index
    %c0_118 = arith.constant 0 : index
    %118 = vector.load %arg4[%c2_116, %c0_117, %c0_118] : memref<9x4x4xf32, #tpu.memory_space<vmem>>, vector<1x4x4xf32>
    %119 = vector.shape_cast %118 : vector<1x4x4xf32> to vector<4x4xf32>
    %c0_119 = arith.constant 0 : index
    %c2_120 = arith.constant 2 : index
    %120 = vector.load %arg9[%c0_119, %c2_120] : memref<4x342xf32, #tpu.memory_space<vmem>>, vector<4x288xf32>
    %cst_121 = arith.constant dense<0.000000e+00> : vector<4x288xf32>
    %121 = tpu.matmul %119, %120, %cst_121 {dimension_numbers = #tpu.dot_dimension_numbers<[1], [0], [0], [1], [0, 0, 1, 1], [], []>} : vector<4x4xf32>, vector<4x288xf32>, vector<4x288xf32> -> vector<4x288xf32>
    %122 = arith.addf %117, %121 : vector<4x288xf32>
    %c3_122 = arith.constant 3 : index
    %c0_123 = arith.constant 0 : index
    %c0_124 = arith.constant 0 : index
    %123 = vector.load %arg4[%c3_122, %c0_123, %c0_124] : memref<9x4x4xf32, #tpu.memory_space<vmem>>, vector<1x4x4xf32>
    %124 = vector.shape_cast %123 : vector<1x4x4xf32> to vector<4x4xf32>
    %c0_125 = arith.constant 0 : index
    %c18_126 = arith.constant 18 : index
    %125 = vector.load %arg9[%c0_125, %c18_126] : memref<4x342xf32, #tpu.memory_space<vmem>>, vector<4x288xf32>
    %cst_127 = arith.constant dense<0.000000e+00> : vector<4x288xf32>
    %126 = tpu.matmul %124, %125, %cst_127 {dimension_numbers = #tpu.dot_dimension_numbers<[1], [0], [0], [1], [0, 0, 1, 1], [], []>} : vector<4x4xf32>, vector<4x288xf32>, vector<4x288xf32> -> vector<4x288xf32>
    %127 = arith.addf %122, %126 : vector<4x288xf32>
    %c4_128 = arith.constant 4 : index
    %c0_129 = arith.constant 0 : index
    %c0_130 = arith.constant 0 : index
    %128 = vector.load %arg4[%c4_128, %c0_129, %c0_130] : memref<9x4x4xf32, #tpu.memory_space<vmem>>, vector<1x4x4xf32>
    %129 = vector.shape_cast %128 : vector<1x4x4xf32> to vector<4x4xf32>
    %c0_131 = arith.constant 0 : index
    %c19_132 = arith.constant 19 : index
    %130 = vector.load %arg9[%c0_131, %c19_132] : memref<4x342xf32, #tpu.memory_space<vmem>>, vector<4x288xf32>
    %cst_133 = arith.constant dense<0.000000e+00> : vector<4x288xf32>
    %131 = tpu.matmul %129, %130, %cst_133 {dimension_numbers = #tpu.dot_dimension_numbers<[1], [0], [0], [1], [0, 0, 1, 1], [], []>} : vector<4x4xf32>, vector<4x288xf32>, vector<4x288xf32> -> vector<4x288xf32>
    %132 = arith.addf %127, %131 : vector<4x288xf32>
    %c5_134 = arith.constant 5 : index
    %c0_135 = arith.constant 0 : index
    %c0_136 = arith.constant 0 : index
    %133 = vector.load %arg4[%c5_134, %c0_135, %c0_136] : memref<9x4x4xf32, #tpu.memory_space<vmem>>, vector<1x4x4xf32>
    %134 = vector.shape_cast %133 : vector<1x4x4xf32> to vector<4x4xf32>
    %c0_137 = arith.constant 0 : index
    %c20_138 = arith.constant 20 : index
    %135 = vector.load %arg9[%c0_137, %c20_138] : memref<4x342xf32, #tpu.memory_space<vmem>>, vector<4x288xf32>
    %cst_139 = arith.constant dense<0.000000e+00> : vector<4x288xf32>
    %136 = tpu.matmul %134, %135, %cst_139 {dimension_numbers = #tpu.dot_dimension_numbers<[1], [0], [0], [1], [0, 0, 1, 1], [], []>} : vector<4x4xf32>, vector<4x288xf32>, vector<4x288xf32> -> vector<4x288xf32>
    %137 = arith.addf %132, %136 : vector<4x288xf32>
    %c6_140 = arith.constant 6 : index
    %c0_141 = arith.constant 0 : index
    %c0_142 = arith.constant 0 : index
    %138 = vector.load %arg4[%c6_140, %c0_141, %c0_142] : memref<9x4x4xf32, #tpu.memory_space<vmem>>, vector<1x4x4xf32>
    %139 = vector.shape_cast %138 : vector<1x4x4xf32> to vector<4x4xf32>
    %c0_143 = arith.constant 0 : index
    %c36_144 = arith.constant 36 : index
    %140 = vector.load %arg9[%c0_143, %c36_144] : memref<4x342xf32, #tpu.memory_space<vmem>>, vector<4x288xf32>
    %cst_145 = arith.constant dense<0.000000e+00> : vector<4x288xf32>
    %141 = tpu.matmul %139, %140, %cst_145 {dimension_numbers = #tpu.dot_dimension_numbers<[1], [0], [0], [1], [0, 0, 1, 1], [], []>} : vector<4x4xf32>, vector<4x288xf32>, vector<4x288xf32> -> vector<4x288xf32>
    %142 = arith.addf %137, %141 : vector<4x288xf32>
    %c7_146 = arith.constant 7 : index
    %c0_147 = arith.constant 0 : index
    %c0_148 = arith.constant 0 : index
    %143 = vector.load %arg4[%c7_146, %c0_147, %c0_148] : memref<9x4x4xf32, #tpu.memory_space<vmem>>, vector<1x4x4xf32>
    %144 = vector.shape_cast %143 : vector<1x4x4xf32> to vector<4x4xf32>
    %c0_149 = arith.constant 0 : index
    %c37_150 = arith.constant 37 : index
    %145 = vector.load %arg9[%c0_149, %c37_150] : memref<4x342xf32, #tpu.memory_space<vmem>>, vector<4x288xf32>
    %cst_151 = arith.constant dense<0.000000e+00> : vector<4x288xf32>
    %146 = tpu.matmul %144, %145, %cst_151 {dimension_numbers = #tpu.dot_dimension_numbers<[1], [0], [0], [1], [0, 0, 1, 1], [], []>} : vector<4x4xf32>, vector<4x288xf32>, vector<4x288xf32> -> vector<4x288xf32>
    %147 = arith.addf %142, %146 : vector<4x288xf32>
    %c8_152 = arith.constant 8 : index
    %c0_153 = arith.constant 0 : index
    %c0_154 = arith.constant 0 : index
    %148 = vector.load %arg4[%c8_152, %c0_153, %c0_154] : memref<9x4x4xf32, #tpu.memory_space<vmem>>, vector<1x4x4xf32>
    %149 = vector.shape_cast %148 : vector<1x4x4xf32> to vector<4x4xf32>
    %c0_155 = arith.constant 0 : index
    %c38_156 = arith.constant 38 : index
    %150 = vector.load %arg9[%c0_155, %c38_156] : memref<4x342xf32, #tpu.memory_space<vmem>>, vector<4x288xf32>
    %cst_157 = arith.constant dense<0.000000e+00> : vector<4x288xf32>
    %151 = tpu.matmul %149, %150, %cst_157 {dimension_numbers = #tpu.dot_dimension_numbers<[1], [0], [0], [1], [0, 0, 1, 1], [], []>} : vector<4x4xf32>, vector<4x288xf32>, vector<4x288xf32> -> vector<4x288xf32>
    %152 = arith.addf %147, %151 : vector<4x288xf32>
    %c0_158 = arith.constant 0 : index
    %c0_159 = arith.constant 0 : index
    %153 = vector.load %arg5[%c0_158, %c0_159] : memref<4x1xf32, #tpu.memory_space<vmem>>, vector<4x1xf32>
    %154 = vector.broadcast %153 : vector<4x1xf32> to vector<4x288xf32>
    %155 = arith.addf %152, %154 : vector<4x288xf32>
    %c0_160 = arith.constant 0 : index
    %c0_161 = arith.constant 0 : index
    %c0_162 = arith.constant 0 : index
    %156 = vector.load %arg1[%c0_160, %c0_161, %c0_162] : memref<1x4x256xf32, #tpu.memory_space<vmem>>, vector<1x4x16xf32>
    %157 = vector.shape_cast %156 : vector<1x4x16xf32> to vector<4x16xf32>
    %158 = vector.extract_strided_slice %155 {offsets = [0, 0], sizes = [4, 16], strides = [1, 1]} : vector<4x288xf32> to vector<4x16xf32>
    %159 = arith.addf %157, %158 : vector<4x16xf32>
    %c0_163 = arith.constant 0 : index
    %c0_164 = arith.constant 0 : index
    %c0_165 = arith.constant 0 : index
    %160 = vector.load %arg7[%c0_163, %c0_164, %c0_165] : memref<1x4x256xf32, #tpu.memory_space<vmem>>, vector<1x4x16xf32>
    %161 = vector.shape_cast %160 : vector<1x4x16xf32> to vector<4x16xf32>
    %162 = vector.shape_cast %159 : vector<4x16xf32> to vector<1x4x16xf32>
    tpu.vector_store %arg7[%c0_163, %c0_164, %c0_165], %162 {strides = array<i32>} : memref<1x4x256xf32, #tpu.memory_space<vmem>>, vector<1x4x16xf32>,
    %c0_166 = arith.constant 0 : index
    %c0_167 = arith.constant 0 : index
    %c16_168 = arith.constant 16 : index
    %163 = vector.load %arg1[%c0_166, %c0_167, %c16_168] : memref<1x4x256xf32, #tpu.memory_space<vmem>>, vector<1x4x16xf32>
    %164 = vector.shape_cast %163 : vector<1x4x16xf32> to vector<4x16xf32>
    %165 = vector.extract_strided_slice %155 {offsets = [0, 18], sizes = [4, 16], strides = [1, 1]} : vector<4x288xf32> to vector<4x16xf32>
    %166 = arith.addf %164, %165 : vector<4x16xf32>
    %c0_169 = arith.constant 0 : index
    %c0_170 = arith.constant 0 : index
    %c16_171 = arith.constant 16 : index
    %167 = vector.load %arg7[%c0_169, %c0_170, %c16_171] : memref<1x4x256xf32, #tpu.memory_space<vmem>>, vector<1x4x16xf32>
    %168 = vector.shape_cast %167 : vector<1x4x16xf32> to vector<4x16xf32>
    %169 = vector.shape_cast %166 : vector<4x16xf32> to vector<1x4x16xf32>
    tpu.vector_store %arg7[%c0_169, %c0_170, %c16_171], %169 {strides = array<i32>} : memref<1x4x256xf32, #tpu.memory_space<vmem>>, vector<1x4x16xf32>,
    %c0_172 = arith.constant 0 : index
    %c0_173 = arith.constant 0 : index
    %c32_174 = arith.constant 32 : index
    %170 = vector.load %arg1[%c0_172, %c0_173, %c32_174] : memref<1x4x256xf32, #tpu.memory_space<vmem>>, vector<1x4x16xf32>
    %171 = vector.shape_cast %170 : vector<1x4x16xf32> to vector<4x16xf32>
    %172 = vector.extract_strided_slice %155 {offsets = [0, 36], sizes = [4, 16], strides = [1, 1]} : vector<4x288xf32> to vector<4x16xf32>
    %173 = arith.addf %171, %172 : vector<4x16xf32>
    %c0_175 = arith.constant 0 : index
    %c0_176 = arith.constant 0 : index
    %c32_177 = arith.constant 32 : index
    %174 = vector.load %arg7[%c0_175, %c0_176, %c32_177] : memref<1x4x256xf32, #tpu.memory_space<vmem>>, vector<1x4x16xf32>
    %175 = vector.shape_cast %174 : vector<1x4x16xf32> to vector<4x16xf32>
    %176 = vector.shape_cast %173 : vector<4x16xf32> to vector<1x4x16xf32>
    tpu.vector_store %arg7[%c0_175, %c0_176, %c32_177], %176 {strides = array<i32>} : memref<1x4x256xf32, #tpu.memory_space<vmem>>, vector<1x4x16xf32>,
    %c0_178 = arith.constant 0 : index
    %c0_179 = arith.constant 0 : index
    %c48_180 = arith.constant 48 : index
    %177 = vector.load %arg1[%c0_178, %c0_179, %c48_180] : memref<1x4x256xf32, #tpu.memory_space<vmem>>, vector<1x4x16xf32>
    %178 = vector.shape_cast %177 : vector<1x4x16xf32> to vector<4x16xf32>
    %179 = vector.extract_strided_slice %155 {offsets = [0, 54], sizes = [4, 16], strides = [1, 1]} : vector<4x288xf32> to vector<4x16xf32>
    %180 = arith.addf %178, %179 : vector<4x16xf32>
    %c0_181 = arith.constant 0 : index
    %c0_182 = arith.constant 0 : index
    %c48_183 = arith.constant 48 : index
    %181 = vector.load %arg7[%c0_181, %c0_182, %c48_183] : memref<1x4x256xf32, #tpu.memory_space<vmem>>, vector<1x4x16xf32>
    %182 = vector.shape_cast %181 : vector<1x4x16xf32> to vector<4x16xf32>
    %183 = vector.shape_cast %180 : vector<4x16xf32> to vector<1x4x16xf32>
    tpu.vector_store %arg7[%c0_181, %c0_182, %c48_183], %183 {strides = array<i32>} : memref<1x4x256xf32, #tpu.memory_space<vmem>>, vector<1x4x16xf32>,
    %c0_184 = arith.constant 0 : index
    %c0_185 = arith.constant 0 : index
    %c64_186 = arith.constant 64 : index
    %184 = vector.load %arg1[%c0_184, %c0_185, %c64_186] : memref<1x4x256xf32, #tpu.memory_space<vmem>>, vector<1x4x16xf32>
    %185 = vector.shape_cast %184 : vector<1x4x16xf32> to vector<4x16xf32>
    %186 = vector.extract_strided_slice %155 {offsets = [0, 72], sizes = [4, 16], strides = [1, 1]} : vector<4x288xf32> to vector<4x16xf32>
    %187 = arith.addf %185, %186 : vector<4x16xf32>
    %c0_187 = arith.constant 0 : index
    %c0_188 = arith.constant 0 : index
    %c64_189 = arith.constant 64 : index
    %188 = vector.load %arg7[%c0_187, %c0_188, %c64_189] : memref<1x4x256xf32, #tpu.memory_space<vmem>>, vector<1x4x16xf32>
    %189 = vector.shape_cast %188 : vector<1x4x16xf32> to vector<4x16xf32>
    %190 = vector.shape_cast %187 : vector<4x16xf32> to vector<1x4x16xf32>
    tpu.vector_store %arg7[%c0_187, %c0_188, %c64_189], %190 {strides = array<i32>} : memref<1x4x256xf32, #tpu.memory_space<vmem>>, vector<1x4x16xf32>,
    %c0_190 = arith.constant 0 : index
    %c0_191 = arith.constant 0 : index
    %c80_192 = arith.constant 80 : index
    %191 = vector.load %arg1[%c0_190, %c0_191, %c80_192] : memref<1x4x256xf32, #tpu.memory_space<vmem>>, vector<1x4x16xf32>
    %192 = vector.shape_cast %191 : vector<1x4x16xf32> to vector<4x16xf32>
    %193 = vector.extract_strided_slice %155 {offsets = [0, 90], sizes = [4, 16], strides = [1, 1]} : vector<4x288xf32> to vector<4x16xf32>
    %194 = arith.addf %192, %193 : vector<4x16xf32>
    %c0_193 = arith.constant 0 : index
    %c0_194 = arith.constant 0 : index
    %c80_195 = arith.constant 80 : index
    %195 = vector.load %arg7[%c0_193, %c0_194, %c80_195] : memref<1x4x256xf32, #tpu.memory_space<vmem>>, vector<1x4x16xf32>
    %196 = vector.shape_cast %195 : vector<1x4x16xf32> to vector<4x16xf32>
    %197 = vector.shape_cast %194 : vector<4x16xf32> to vector<1x4x16xf32>
    tpu.vector_store %arg7[%c0_193, %c0_194, %c80_195], %197 {strides = array<i32>} : memref<1x4x256xf32, #tpu.memory_space<vmem>>, vector<1x4x16xf32>,
    %c0_196 = arith.constant 0 : index
    %c0_197 = arith.constant 0 : index
    %c96_198 = arith.constant 96 : index
    %198 = vector.load %arg1[%c0_196, %c0_197, %c96_198] : memref<1x4x256xf32, #tpu.memory_space<vmem>>, vector<1x4x16xf32>
    %199 = vector.shape_cast %198 : vector<1x4x16xf32> to vector<4x16xf32>
    %200 = vector.extract_strided_slice %155 {offsets = [0, 108], sizes = [4, 16], strides = [1, 1]} : vector<4x288xf32> to vector<4x16xf32>
    %201 = arith.addf %199, %200 : vector<4x16xf32>
    %c0_199 = arith.constant 0 : index
    %c0_200 = arith.constant 0 : index
    %c96_201 = arith.constant 96 : index
    %202 = vector.load %arg7[%c0_199, %c0_200, %c96_201] : memref<1x4x256xf32, #tpu.memory_space<vmem>>, vector<1x4x16xf32>
    %203 = vector.shape_cast %202 : vector<1x4x16xf32> to vector<4x16xf32>
    %204 = vector.shape_cast %201 : vector<4x16xf32> to vector<1x4x16xf32>
    tpu.vector_store %arg7[%c0_199, %c0_200, %c96_201], %204 {strides = array<i32>} : memref<1x4x256xf32, #tpu.memory_space<vmem>>, vector<1x4x16xf32>,
    %c0_202 = arith.constant 0 : index
    %c0_203 = arith.constant 0 : index
    %c112_204 = arith.constant 112 : index
    %205 = vector.load %arg1[%c0_202, %c0_203, %c112_204] : memref<1x4x256xf32, #tpu.memory_space<vmem>>, vector<1x4x16xf32>
    %206 = vector.shape_cast %205 : vector<1x4x16xf32> to vector<4x16xf32>
    %207 = vector.extract_strided_slice %155 {offsets = [0, 126], sizes = [4, 16], strides = [1, 1]} : vector<4x288xf32> to vector<4x16xf32>
    %208 = arith.addf %206, %207 : vector<4x16xf32>
    %c0_205 = arith.constant 0 : index
    %c0_206 = arith.constant 0 : index
    %c112_207 = arith.constant 112 : index
    %209 = vector.load %arg7[%c0_205, %c0_206, %c112_207] : memref<1x4x256xf32, #tpu.memory_space<vmem>>, vector<1x4x16xf32>
    %210 = vector.shape_cast %209 : vector<1x4x16xf32> to vector<4x16xf32>
    %211 = vector.shape_cast %208 : vector<4x16xf32> to vector<1x4x16xf32>
    tpu.vector_store %arg7[%c0_205, %c0_206, %c112_207], %211 {strides = array<i32>} : memref<1x4x256xf32, #tpu.memory_space<vmem>>, vector<1x4x16xf32>,
    %c0_208 = arith.constant 0 : index
    %c0_209 = arith.constant 0 : index
    %c128_210 = arith.constant 128 : index
    %212 = vector.load %arg1[%c0_208, %c0_209, %c128_210] : memref<1x4x256xf32, #tpu.memory_space<vmem>>, vector<1x4x16xf32>
    %213 = vector.shape_cast %212 : vector<1x4x16xf32> to vector<4x16xf32>
    %214 = vector.extract_strided_slice %155 {offsets = [0, 144], sizes = [4, 16], strides = [1, 1]} : vector<4x288xf32> to vector<4x16xf32>
    %215 = arith.addf %213, %214 : vector<4x16xf32>
    %c0_211 = arith.constant 0 : index
    %c0_212 = arith.constant 0 : index
    %c128_213 = arith.constant 128 : index
    %216 = vector.load %arg7[%c0_211, %c0_212, %c128_213] : memref<1x4x256xf32, #tpu.memory_space<vmem>>, vector<1x4x16xf32>
    %217 = vector.shape_cast %216 : vector<1x4x16xf32> to vector<4x16xf32>
    %218 = vector.shape_cast %215 : vector<4x16xf32> to vector<1x4x16xf32>
    tpu.vector_store %arg7[%c0_211, %c0_212, %c128_213], %218 {strides = array<i32>} : memref<1x4x256xf32, #tpu.memory_space<vmem>>, vector<1x4x16xf32>,
    %c0_214 = arith.constant 0 : index
    %c0_215 = arith.constant 0 : index
    %c144_216 = arith.constant 144 : index
    %219 = vector.load %arg1[%c0_214, %c0_215, %c144_216] : memref<1x4x256xf32, #tpu.memory_space<vmem>>, vector<1x4x16xf32>
    %220 = vector.shape_cast %219 : vector<1x4x16xf32> to vector<4x16xf32>
    %221 = vector.extract_strided_slice %155 {offsets = [0, 162], sizes = [4, 16], strides = [1, 1]} : vector<4x288xf32> to vector<4x16xf32>
    %222 = arith.addf %220, %221 : vector<4x16xf32>
    %c0_217 = arith.constant 0 : index
    %c0_218 = arith.constant 0 : index
    %c144_219 = arith.constant 144 : index
    %223 = vector.load %arg7[%c0_217, %c0_218, %c144_219] : memref<1x4x256xf32, #tpu.memory_space<vmem>>, vector<1x4x16xf32>
    %224 = vector.shape_cast %223 : vector<1x4x16xf32> to vector<4x16xf32>
    %225 = vector.shape_cast %222 : vector<4x16xf32> to vector<1x4x16xf32>
    tpu.vector_store %arg7[%c0_217, %c0_218, %c144_219], %225 {strides = array<i32>} : memref<1x4x256xf32, #tpu.memory_space<vmem>>, vector<1x4x16xf32>,
    %c0_220 = arith.constant 0 : index
    %c0_221 = arith.constant 0 : index
    %c160_222 = arith.constant 160 : index
    %226 = vector.load %arg1[%c0_220, %c0_221, %c160_222] : memref<1x4x256xf32, #tpu.memory_space<vmem>>, vector<1x4x16xf32>
    %227 = vector.shape_cast %226 : vector<1x4x16xf32> to vector<4x16xf32>
    %228 = vector.extract_strided_slice %155 {offsets = [0, 180], sizes = [4, 16], strides = [1, 1]} : vector<4x288xf32> to vector<4x16xf32>
    %229 = arith.addf %227, %228 : vector<4x16xf32>
    %c0_223 = arith.constant 0 : index
    %c0_224 = arith.constant 0 : index
    %c160_225 = arith.constant 160 : index
    %230 = vector.load %arg7[%c0_223, %c0_224, %c160_225] : memref<1x4x256xf32, #tpu.memory_space<vmem>>, vector<1x4x16xf32>
    %231 = vector.shape_cast %230 : vector<1x4x16xf32> to vector<4x16xf32>
    %232 = vector.shape_cast %229 : vector<4x16xf32> to vector<1x4x16xf32>
    tpu.vector_store %arg7[%c0_223, %c0_224, %c160_225], %232 {strides = array<i32>} : memref<1x4x256xf32, #tpu.memory_space<vmem>>, vector<1x4x16xf32>,
    %c0_226 = arith.constant 0 : index
    %c0_227 = arith.constant 0 : index
    %c176_228 = arith.constant 176 : index
    %233 = vector.load %arg1[%c0_226, %c0_227, %c176_228] : memref<1x4x256xf32, #tpu.memory_space<vmem>>, vector<1x4x16xf32>
    %234 = vector.shape_cast %233 : vector<1x4x16xf32> to vector<4x16xf32>
    %235 = vector.extract_strided_slice %155 {offsets = [0, 198], sizes = [4, 16], strides = [1, 1]} : vector<4x288xf32> to vector<4x16xf32>
    %236 = arith.addf %234, %235 : vector<4x16xf32>
    %c0_229 = arith.constant 0 : index
    %c0_230 = arith.constant 0 : index
    %c176_231 = arith.constant 176 : index
    %237 = vector.load %arg7[%c0_229, %c0_230, %c176_231] : memref<1x4x256xf32, #tpu.memory_space<vmem>>, vector<1x4x16xf32>
    %238 = vector.shape_cast %237 : vector<1x4x16xf32> to vector<4x16xf32>
    %239 = vector.shape_cast %236 : vector<4x16xf32> to vector<1x4x16xf32>
    tpu.vector_store %arg7[%c0_229, %c0_230, %c176_231], %239 {strides = array<i32>} : memref<1x4x256xf32, #tpu.memory_space<vmem>>, vector<1x4x16xf32>,
    %c0_232 = arith.constant 0 : index
    %c0_233 = arith.constant 0 : index
    %c192_234 = arith.constant 192 : index
    %240 = vector.load %arg1[%c0_232, %c0_233, %c192_234] : memref<1x4x256xf32, #tpu.memory_space<vmem>>, vector<1x4x16xf32>
    %241 = vector.shape_cast %240 : vector<1x4x16xf32> to vector<4x16xf32>
    %242 = vector.extract_strided_slice %155 {offsets = [0, 216], sizes = [4, 16], strides = [1, 1]} : vector<4x288xf32> to vector<4x16xf32>
    %243 = arith.addf %241, %242 : vector<4x16xf32>
    %c0_235 = arith.constant 0 : index
    %c0_236 = arith.constant 0 : index
    %c192_237 = arith.constant 192 : index
    %244 = vector.load %arg7[%c0_235, %c0_236, %c192_237] : memref<1x4x256xf32, #tpu.memory_space<vmem>>, vector<1x4x16xf32>
    %245 = vector.shape_cast %244 : vector<1x4x16xf32> to vector<4x16xf32>
    %246 = vector.shape_cast %243 : vector<4x16xf32> to vector<1x4x16xf32>
    tpu.vector_store %arg7[%c0_235, %c0_236, %c192_237], %246 {strides = array<i32>} : memref<1x4x256xf32, #tpu.memory_space<vmem>>, vector<1x4x16xf32>,
    %c0_238 = arith.constant 0 : index
    %c0_239 = arith.constant 0 : index
    %c208_240 = arith.constant 208 : index
    %247 = vector.load %arg1[%c0_238, %c0_239, %c208_240] : memref<1x4x256xf32, #tpu.memory_space<vmem>>, vector<1x4x16xf32>
    %248 = vector.shape_cast %247 : vector<1x4x16xf32> to vector<4x16xf32>
    %249 = vector.extract_strided_slice %155 {offsets = [0, 234], sizes = [4, 16], strides = [1, 1]} : vector<4x288xf32> to vector<4x16xf32>
    %250 = arith.addf %248, %249 : vector<4x16xf32>
    %c0_241 = arith.constant 0 : index
    %c0_242 = arith.constant 0 : index
    %c208_243 = arith.constant 208 : index
    %251 = vector.load %arg7[%c0_241, %c0_242, %c208_243] : memref<1x4x256xf32, #tpu.memory_space<vmem>>, vector<1x4x16xf32>
    %252 = vector.shape_cast %251 : vector<1x4x16xf32> to vector<4x16xf32>
    %253 = vector.shape_cast %250 : vector<4x16xf32> to vector<1x4x16xf32>
    tpu.vector_store %arg7[%c0_241, %c0_242, %c208_243], %253 {strides = array<i32>} : memref<1x4x256xf32, #tpu.memory_space<vmem>>, vector<1x4x16xf32>,
    %c0_244 = arith.constant 0 : index
    %c0_245 = arith.constant 0 : index
    %c224_246 = arith.constant 224 : index
    %254 = vector.load %arg1[%c0_244, %c0_245, %c224_246] : memref<1x4x256xf32, #tpu.memory_space<vmem>>, vector<1x4x16xf32>
    %255 = vector.shape_cast %254 : vector<1x4x16xf32> to vector<4x16xf32>
    %256 = vector.extract_strided_slice %155 {offsets = [0, 252], sizes = [4, 16], strides = [1, 1]} : vector<4x288xf32> to vector<4x16xf32>
    %257 = arith.addf %255, %256 : vector<4x16xf32>
    %c0_247 = arith.constant 0 : index
    %c0_248 = arith.constant 0 : index
    %c224_249 = arith.constant 224 : index
    %258 = vector.load %arg7[%c0_247, %c0_248, %c224_249] : memref<1x4x256xf32, #tpu.memory_space<vmem>>, vector<1x4x16xf32>
    %259 = vector.shape_cast %258 : vector<1x4x16xf32> to vector<4x16xf32>
    %260 = vector.shape_cast %257 : vector<4x16xf32> to vector<1x4x16xf32>
    tpu.vector_store %arg7[%c0_247, %c0_248, %c224_249], %260 {strides = array<i32>} : memref<1x4x256xf32, #tpu.memory_space<vmem>>, vector<1x4x16xf32>,
    %c0_250 = arith.constant 0 : index
    %c0_251 = arith.constant 0 : index
    %c240_252 = arith.constant 240 : index
    %261 = vector.load %arg1[%c0_250, %c0_251, %c240_252] : memref<1x4x256xf32, #tpu.memory_space<vmem>>, vector<1x4x16xf32>
    %262 = vector.shape_cast %261 : vector<1x4x16xf32> to vector<4x16xf32>
    %263 = vector.extract_strided_slice %155 {offsets = [0, 270], sizes = [4, 16], strides = [1, 1]} : vector<4x288xf32> to vector<4x16xf32>
    %264 = arith.addf %262, %263 : vector<4x16xf32>
    %c0_253 = arith.constant 0 : index
    %c0_254 = arith.constant 0 : index
    %c240_255 = arith.constant 240 : index
    %265 = vector.load %arg7[%c0_253, %c0_254, %c240_255] : memref<1x4x256xf32, #tpu.memory_space<vmem>>, vector<1x4x16xf32>
    %266 = vector.shape_cast %265 : vector<1x4x16xf32> to vector<4x16xf32>
    %267 = vector.shape_cast %264 : vector<4x16xf32> to vector<1x4x16xf32>
    tpu.vector_store %arg7[%c0_253, %c0_254, %c240_255], %267 {strides = array<i32>} : memref<1x4x256xf32, #tpu.memory_space<vmem>>, vector<1x4x16xf32>,
    return
  }
  func.func @transform_0(%arg0: i32) -> (i32, i32, i32) {
    %c0_i32 = arith.constant 0 : i32
    %c0_i32_0 = arith.constant 0 : i32
    %c0_i32_1 = arith.constant 0 : i32
    return %arg0, %c0_i32, %c0_i32_0 : i32, i32, i32
  }
  func.func @transform_1(%arg0: i32) -> (i32, i32, i32) {
    %c0_i32 = arith.constant 0 : i32
    %c0_i32_0 = arith.constant 0 : i32
    %c0_i32_1 = arith.constant 0 : i32
    %c0_i32_2 = arith.constant 0 : i32
    return %c0_i32, %c0_i32_0, %c0_i32_1 : i32, i32, i32
  }
  func.func @transform_2(%arg0: i32) -> (i32, i32) {
    %c0_i32 = arith.constant 0 : i32
    %c0_i32_0 = arith.constant 0 : i32
    %c0_i32_1 = arith.constant 0 : i32
    return %c0_i32, %c0_i32_0 : i32, i32
  }
  func.func @transform_3(%arg0: i32) -> (i32, i32, i32) {
    %c0_i32 = arith.constant 0 : i32
    %c0_i32_0 = arith.constant 0 : i32
    %c0_i32_1 = arith.constant 0 : i32
    %c0_i32_2 = arith.constant 0 : i32
    return %c0_i32, %c0_i32_0, %c0_i32_1 : i32, i32, i32
  }
  func.func @transform_4(%arg0: i32) -> (i32, i32) {
    %c0_i32 = arith.constant 0 : i32
    %c0_i32_0 = arith.constant 0 : i32
    %c0_i32_1 = arith.constant 0 : i32
    return %c0_i32, %c0_i32_0 : i32, i32
  }
  func.func @transform_5(%arg0: i32) -> (i32, i32) {
    %c0_i32 = arith.constant 0 : i32
    %c0_i32_0 = arith.constant 0 : i32
    %c0_i32_1 = arith.constant 0 : i32
    return %c0_i32, %c0_i32_0 : i32, i32
  }
  func.func @transform_6(%arg0: i32) -> (i32, i32, i32) {
    %c0_i32 = arith.constant 0 : i32
    %c0_i32_0 = arith.constant 0 : i32
    %c0_i32_1 = arith.constant 0 : i32
    return %arg0, %c0_i32, %c0_i32_0 : i32, i32, i32
  }
}

</mosaic_0001>

<bundles_post_ra>
// kernel: tpu_custom_call.1
= control target key start
LH: loop header
LB: loop body
LE: loop exit
PB: predicated region body
PF: predicated region fallthrough
CT: control target
= control target key end

     0   :  { %11 = vsyncpa [#allocation5], 0  ;;  %s4591_s0 = inlined_call_operand.vmem [shape: f32[2,4,256], index: 0, kind: input, shape index: {}]   ;;  %s4592_s1 = inlined_call_operand.vmem [shape: f32[9,4,4], index: 1, kind: input, shape index: {}]   ;;  %s4593_s2 = inlined_call_operand.vmem [shape: f32[4,1], index: 2, kind: input, shape index: {}]   ;;  %s4594_s3 = inlined_call_operand.vmem [shape: f32[9,4,4], index: 3, kind: input, shape index: {}]   ;;  %s4595_s4 = inlined_call_operand.vmem [shape: f32[4,1], index: 4, kind: input, shape index: {}]   ;;  %s4596_s5 = inlined_call_operand.vmem [shape: f32[1,288], index: 5, kind: input, shape index: {}]   ;;  %s4597_s6 = inlined_call_operand.hbm [shape: f32[2,4,256], index: 6, kind: output, shape index: {}]  }
   0x1   :  { %13 = vsyncpa [#allocation5 + $0x1], 0  ;;  %s4082_s21 = smov 0   ;;  %s4084_s22 = smov 0  }
   0x2   :  { %s4086_s23 = smov 0   ;;  %s4088_s24 = smov 0  }
   0x3 LB: > { %s4103_s25 = sadd.s32 4294967295, %s4005_s24   ;;  %s3618_s26 = sadd.s32 4294967294, %s4005_s24   ;;  %s4005_s24 = sphi %s4088_s24, %s4603_s24   ;;  %s4001_s23 = sphi %s4086_s23, %s4602_s23   ;;  %s3997_s22 = sphi %s4084_s22, %s4601_s22   ;;  %s3993_s21 = sphi %s4082_s21, %s4600_s21  }
   0x4   : > { %s4107_s27 = sadd.s32 1, %s4005_s24   ;;  %s157_s28 = sadd.s32 1, %s4001_s23 }
   0x5   : > { %s154_s29 = ssub.s32 %s4005_s24, %s4107_s27  ;;  %p167_p0 = scmp.ne.s32.totalorder %s4001_s23, %s3997_s22 }
   0x6   : > { %p155_p1 = scmp.eq.s32.totalorder %s154_s29, 0  ;;  %p168_p2 = scmp.eq.s32.totalorder %s4103_s25, 1 }
   0x7   : > { %p173_p3 = scmp.ne.s32.totalorder %s3997_s22, %s3993_s21  ;;  %p174_p4 = scmp.eq.s32.totalorder %s3618_s26, 1 }
   0x8   : > { %s4118_s30 = scalar_select %p155_p1, %s4001_s23, %s157_s28  }
   0x9   : > { %p4120_p5 = por %p168_p2, %p167_p0  ;;  %p4124_p6 = por %p174_p4, %p173_p3 }
   0xa   : > { %p3621_p7 = scmp.ge.s32.totalorder %s4005_s24, 1  ;;  %p215_p8 = scmp.lt.s32.totalorder %s4005_s24, 3 }
   0xc   : > { %p216_p9 = pnand %p3621_p7, %p215_p8 }
   0xd   : > { %p245_p10 = scmp.lt.s32.totalorder (!%p216_p9), %s4103_s25, 1  ;;  %s4008_s14 = smov (!%p216_p9), 23  }
   0xe   : > { %219 = sbr.rel (%p216_p9) target bundleno = 1185 (0x4a1), region = 44  ;;  %s4009_s15 = smov (!%p216_p9), 19  }
   0xf   : > { %s4010_s16 = smov (!%p216_p9), 25   ;;  %s4011_s17 = smov (!%p216_p9), 21  }
  0x10   : > { %s4012_s18 = smov (!%p216_p9), 27   ;;  %s4013_s19 = smov (!%p216_p9), 31  }
  0x11   : > { %s4014_s20 = smov (!%p216_p9), 33   ;;  %s4015_s26 = smov (!%p216_p9), 29  }
  0x12   : > { %s4016_s28 = smov (!%p216_p9), 37   ;;  %s4017_s29 = smov (!%p216_p9), 35  }
  0x13   : > { %v4007_v0 = vmov 0.0   ;;  %s246_s9 = scalar_select %p245_p10, %s4103_s25, 1  ;;  %vm251_vm0 = vcmask 699392   ;;  %vm260_vm1 = vcmask 281752   ;;  %vm267_vm2 = vcmask 429352  }
  0x14   : > { %250 = vst [vmem:[#allocation2] sm:$0xff] %v4007_v0  ;;  %253 = vst [vmem:[#allocation3] sm:$0xff] %v4007_v0  ;;  %3774 = vmatprep.subr.mxu1 %v4007_v0  ;;  %469 = vmatprep.mubr.f32.mxu0 %v4007_v0  ;;  %s4020_s11 = smov 41   ;;  %s4021_s12 = smov 43   ;;  %vm274_vm3 = vcmask 576952   ;;  %vm281_vm4 = vcmask 724552  }
  0x15   : > { %s3736_s10 = sshll.u32 %s246_s9, 3  ;;  %252 = vst.msk [vmem:[#allocation2 + $0x8] sm:$0xf] %vm251_vm0, %v4007_v0  ;;  %254 = vst.msk [vmem:[#allocation3 + $0x8] sm:$0xf] %vm251_vm0, %v4007_v0  ;;  %s4018_s9 = smov 45  }
  0x16   : > { %s4139_s13 = scalar_lea.vmem %s4591_s0, %s3736_s10  ;;  %s4019_s10 = smov 39   ;;  %vm288_vm5 = vcmask 872152   ;;  %vm305_vm6 = vcmask 1044472   ;;  %vm306_vm7 = vcmask 121860   ;;  %vm302_vm8 = vcmask 252928  }
  0x17   : > { %v269_v1 = vld [vmem:[%s4139_s13] sm:$0xf]  ;;  %v323_v9 = vld [vmem:[%s4139_s13 + $0x4] sm:$0xf]  ;;  %vm295_vm9 = vcmask 1019752   ;;  %vm307_vm10 = vmor %vm306_vm7, %vm305_vm6  ;;  %vm314_vm11 = vcmask 265352  }
  0x18   : > { %v255_v2 = vld [vmem:[%s4139_s13] sm:$0xf]  ;;  %271 = vrot.lane.b32.xlu1 %v269_v1, %s4008_s14  ;;  %v316_v10 = vld [vmem:[%s4139_s13 + $0x4] sm:$0xf]  ;;  %s4022_s14 = smov 47   ;;  %vm321_vm12 = vcmask 412952  }
  0x19   : > { %257 = vrot.lane.b32.xlu0 %v255_v2, %s4009_s15  ;;  %v276_v3 = vld [vmem:[%s4139_s13] sm:$0xf]  ;;  %v351_v11 = vld [vmem:[%s4139_s13 + $0x4] sm:$0xf]  ;;  %vm328_vm13 = vcmask 560552   ;;  %vm335_vm14 = vcmask 708152  }
  0x1a   : > { %v262_v4 = vld [vmem:[%s4139_s13] sm:$0xf]  ;;  %v330_v12 = vld [vmem:[%s4139_s13 + $0x4] sm:$0xf]  ;;  %vm359_vm15 = vcmask 1044456   ;;  %vm360_vm0 = vcmask 105476  }
  0x1b   : > { %v283_v5 = vld [vmem:[%s4139_s13] sm:$0xf]  ;;  %v337_v13 = vld [vmem:[%s4139_s13 + $0x4] sm:$0xf]  ;;  %vm375_vm6 = vcmask 396552   ;;  %vm4024_vm7 = vmmov 0  }
  0x1c   : > { %278 = vrot.lane.b32.xlu1 %v276_v3, %s4010_s16  ;;  %v297_v6 = vld [vmem:[%s4139_s13] sm:$0xf]  ;;  %v344_v14 = vld [vmem:[%s4139_s13 + $0x4] sm:$0xf]  ;;  %s4023_s16 = smov 49   ;;  %3776 = vmatprep.mubr.msk.f32.mxu1 %vm4024_vm7, %v4007_v0  ;;  %v4032_v46 = vmov 0  }
  0x1d   : > { %264 = vrot.lane.b32.xlu0 %v262_v4, %s4011_s17  ;;  %v309_v7 = vld [vmem:[%s4139_s13] sm:$0xf]  ;;  %v363_v15 = vld [vmem:[%s4139_s13 + $0x4] sm:$0xf]  ;;  %s4025_s17 = smov 126  }
  0x1e   : > { %v290_v8 = vld [vmem:[%s4139_s13] sm:$0xf]  ;;  %v370_v16 = vld [vmem:[%s4139_s13 + $0x4] sm:$0xf]  ;;  %3942 = vset.pattern.permute.xlu0 %v4032_v46  ;;  %v3636_v63 = vld [vmem:[%s4592_s1 + $0x8] sm:$0xf] }
  0x1f   : > { %v1879_v48 = vld [vmem:[%s4593_s2] sm:$0xf]  ;;  %v3625_v53 = vld [vmem:[%s4592_s1 + $0x4] sm:$0xf] }
  0x20   : > { %285 = vrot.lane.b32.xlu1 %v283_v5, %s4012_s18  ;;  %s4026_s18 = smov 127   ;;  %v377_v56 = vld [vmem:[%s4592_s1] sm:$0xf]  ;;  %v3642_v5 = vld [vmem:[%s4592_s1 + $0xc] sm:$0xf] }
  0x21   : > { %299 = vrot.lane.b32.xlu0 %v297_v6, %s4013_s19  ;;  %s4027_s19 = smov 109  }
  0x24   : > { %311 = vrot.lane.b32.xlu1 %v309_v7, %s4014_s20  ;;  %s4028_s20 = smov 110  }
  0x25   : > { %292 = vrot.lane.b32.xlu0 %v290_v8, %s4015_s26  ;;  %s4029_s26 = smov 108  }
  0x28   : > { %325 = vrot.lane.b32.xlu1 %v323_v9, %s4016_s28  ;;  %s4030_s28 = smov 92  }
  0x29   : > { %318 = vrot.lane.b32.xlu0 %v316_v10, %s4017_s29  ;;  %s4031_s29 = smov 91   ;;  %v3648_v10 = vld [vmem:[%s4592_s1 + $0x10] sm:$0xf] }
  0x2c   : > { %353 = vrot.lane.b32.xlu1 %v351_v11, %s4018_s9  ;;  %s4033_s9 = smov 90  }
  0x2d   : > { %332 = vrot.lane.b32.xlu0 %v330_v12, %s4019_s10  ;;  %s242_s10 = sand.u32 1, %s3997_s22  }
  0x30   : > { %346 = vrot.lane.b32.xlu1 %v344_v14, %s4021_s12  ;;  %s4040_s12 = smov 100  }
  0x31   : > { %339 = vrot.lane.b32.xlu0 %v337_v13, %s4020_s11  ;;  %s3622_s11 = sshll.u32 %s242_s10, 3 }
  0x34   : > { %372 = vrot.lane.b32.xlu1 %v370_v16, %s4023_s16  ;;  %s4042_s16 = smov 114  }
  0x35   : > { %365 = vrot.lane.b32.xlu0 %v363_v15, %s4022_s14  ;;  %v3654_v15 = vld [vmem:[%s4592_s1 + $0x14] sm:$0xf]  ;;  %s4041_s14 = smov 104  }
  0x8a   : > { %v272_v17 = vpop.permute.xlu1 %271 }
  0x8b   : > { %v258_v18 = vpop.permute.xlu0 %257 }
  0x8c   : > { %261 = vst.msk [vmem:[#allocation2] sm:$0xf] %vm260_vm1, %v258_v18  ;;  %vm342_vm1 = vcmask 855752  }
  0x8e   : > { %v279_v19 = vpop.permute.xlu1 %278 }
  0x8f   : > { %v265_v20 = vpop.permute.xlu0 %264 }
  0x90   : > { %268 = vst.msk [vmem:[#allocation2] sm:$0xf] %vm267_vm2, %v265_v20  ;;  %vm356_vm2 = vcmask 367616   ;;  %v3660_v20 = vld [vmem:[%s4592_s1 + $0x18] sm:$0xf] }
  0x91   : > { %275 = vst.msk [vmem:[#allocation2] sm:$0xf] %vm274_vm3, %v272_v17  ;;  %vm349_vm3 = vcmask 1003352  }
  0x92   : > { %282 = vst.msk [vmem:[#allocation2] sm:$0xf] %vm281_vm4, %v279_v19  ;;  %v286_v21 = vpop.permute.xlu1 %285  ;;  %vm361_vm4 = vmor %vm360_vm0, %vm359_vm15  ;;  %vm1385_vm15 = vcmask 752640   ;;  %vm1554_vm0 = vcmask 744448  }
  0x93   : > { %v300_v22 = vpop.permute.xlu0 %299  ;;  %289 = vst.msk [vmem:[#allocation2] sm:$0xf] %vm288_vm5, %v286_v21  ;;  %vm368_vm5 = vcmask 248952  }
  0x94   : > { %v301_v23 = vrot.slane %v300_v22, 4 }
  0x96   : > { %v312_v24 = vpop.permute.xlu1 %311  ;;  %v303_v26 = vsel %vm302_vm8, %v301_v23, %v300_v22  ;;  %vm398_vm8 = vcmask 1043456  }
  0x97   : > { %v293_v25 = vpop.permute.xlu0 %292 }
  0x98   : > { %296 = vst.msk [vmem:[#allocation2] sm:$0xf] %vm295_vm9, %v293_v25  ;;  %vm394_vm9 = vcmask 31744   ;;  %v3666_v25 = vld [vmem:[%s4592_s1 + $0x1c] sm:$0xf] }
  0x99   : > { %308 = vst.msk [vmem:[#allocation2] sm:$0xff] %vm307_vm10, %v303_v26  ;;  %vm391_vm10 = vcmask 1039360  }
  0x9a   : > { %315 = vst.msk [vmem:[#allocation2 + $0x4] sm:$0xf] %vm314_vm11, %v312_v24  ;;  %v326_v27 = vpop.permute.xlu1 %325  ;;  %vm709_vm11 = vcmask 1031168  }
  0x9b   : > { %v319_v28 = vpop.permute.xlu0 %318 }
  0x9c   : > { %322 = vst.msk [vmem:[#allocation2 + $0x4] sm:$0xf] %vm321_vm12, %v319_v28  ;;  %vm878_vm12 = vcmask 900096  }
  0x9d   : > { %329 = vst.msk [vmem:[#allocation2 + $0x4] sm:$0xf] %vm328_vm13, %v326_v27  ;;  %vm1047_vm13 = vcmask 891904  }
  0x9e   : > { %v354_v29 = vpop.permute.xlu1 %353 }
  0x9f   : > { %v333_v30 = vpop.permute.xlu0 %332  ;;  %v355_v31 = vrot.slane %v354_v29, 4 }
  0xa0   : > { %336 = vst.msk [vmem:[#allocation2 + $0x4] sm:$0xf] %vm335_vm14, %v333_v30  ;;  %vm1216_vm14 = vcmask 883712   ;;  %v3672_v30 = vld [vmem:[%s4592_s1 + $0x20] sm:$0xf] }
  0xa1   : > { %v357_v34 = vsel %vm356_vm2, %v355_v31, %v354_v29  ;;  %vm1925_vm2 = vcmask 1043608  }
  0xa2   : > { %v347_v33 = vpop.permute.xlu1 %346 }
  0xa3   : > { %v340_v32 = vpop.permute.xlu0 %339 }
  0xa4   : > { %343 = vst.msk [vmem:[#allocation2 + $0x4] sm:$0xf] %vm342_vm1, %v340_v32  ;;  %vm1723_vm1 = vcmask 736256  }
  0xa5   : > { %350 = vst.msk [vmem:[#allocation2 + $0x4] sm:$0xf] %vm349_vm3, %v347_v33  ;;  %vm1926_vm3 = vcmask 1047556  }
  0xa6   : > { %362 = vst.msk [vmem:[#allocation2 + $0x4] sm:$0xff] %vm361_vm4, %v357_v34  ;;  %v373_v36 = vpop.permute.xlu1 %372  ;;  %vm1920_vm4 = vcmask 154624  }
  0xa7   : > { %v366_v35 = vpop.permute.xlu0 %365 }
  0xa8   : > { %369 = vst.msk [vmem:[#allocation2 + $0x8] sm:$0xf] %vm368_vm5, %v366_v35  ;;  %vm1927_vm5 = vmor %vm1926_vm3, %vm1925_vm2 }
  0xa9   : > { %376 = vst.msk [vmem:[#allocation2 + $0x8] sm:$0xf] %vm375_vm6, %v373_v36  ;;  %vm1929_vm6 = vcmask 412672  }
  0xad   : > { %v4162_v37 = vld [vmem:[#allocation2] sm:$0xff] }
  0xae   : > { %703 = vrot.lane.b32.xlu1 %v4162_v37, %s4025_s17  ;;  %385 = vrot.lane.b32.xlu0 %v4162_v37, %s4026_s18  ;;  %v702_v39 = vcombine.high %v4162_v37, %v4162_v37 }
  0xb0   : > { %v379_v38 = vld [vmem:[#allocation2 + $0x8] sm:$0xf] }
  0xb1   : > { %v699_v40 = vld [vmem:[#allocation2 + $0x8] sm:$0xf] }
  0xb2   : > { %1041 = vrot.lane.b32.xlu1 %v4162_v37, %s4027_s19  ;;  %872 = vrot.lane.b32.xlu0 %v4162_v37, %s4028_s20  ;;  %v868_v41 = vld [vmem:[#allocation2 + $0x8] sm:$0xf] }
  0xb3   : > { %v1037_v42 = vld [vmem:[#allocation2 + $0x8] sm:$0xf] }
  0xb4   : > { %v1206_v43 = vld [vmem:[#allocation2 + $0x8] sm:$0xf] }
  0xb5   : > { %v1375_v44 = vld [vmem:[#allocation2 + $0x8] sm:$0xf] }
  0xb6   : > { %1210 = vrot.lane.b32.xlu0 %v4162_v37, %s4029_s26  ;;  %389 = vrot.lane.b32.xlu1 %v379_v38, %s4026_s18  ;;  %v1544_v45 = vld [vmem:[#allocation2 + $0x8] sm:$0xf] }
  0xb7   : > { %v1713_v47 = vld [vmem:[#allocation2 + $0x8] sm:$0xf] }
  0xba   : > { %387 = vrot.lane.b32.xlu0 %v702_v39, %s4026_s18  ;;  %1379 = vrot.lane.b32.xlu1 %v4162_v37, %s4030_s28 }
  0xbe   : > { %1548 = vrot.lane.b32.xlu0 %v4162_v37, %s4031_s29  ;;  %705 = vrot.lane.b32.xlu1 %v702_v39, %s4025_s17 }
  0xc2   : > { %707 = vrot.lane.b32.xlu0 %v699_v40, %s4025_s17  ;;  %876 = vrot.lane.b32.xlu1 %v868_v41, %s4028_s20 }
  0xc6   : > { %874 = vrot.lane.b32.xlu0 %v702_v39, %s4028_s20  ;;  %1043 = vrot.lane.b32.xlu1 %v702_v39, %s4027_s19 }
  0xca   : > { %1045 = vrot.lane.b32.xlu0 %v1037_v42, %s4027_s19  ;;  %1214 = vrot.lane.b32.xlu1 %v1206_v43, %s4029_s26 }
  0xce   : > { %1212 = vrot.lane.b32.xlu0 %v702_v39, %s4029_s26  ;;  %1381 = vrot.lane.b32.xlu1 %v702_v39, %s4030_s28 }
  0xd2   : > { %1383 = vrot.lane.b32.xlu0 %v1375_v44, %s4030_s28  ;;  %1552 = vrot.lane.b32.xlu1 %v1544_v45, %s4031_s29 }
  0xd6   : > { %1550 = vrot.lane.b32.xlu0 %v702_v39, %s4031_s29  ;;  %1719 = vrot.lane.b32.xlu1 %v702_v39, %s4033_s9 }
  0xda   : > { %1721 = vrot.lane.b32.xlu0 %v1713_v47, %s4033_s9  ;;  %1717 = vrot.lane.b32.xlu1 %v4162_v37, %s4033_s9 }
  0xde   : > { %1882 = vperm.xlu0 %3942, %v1879_v48  }
 0x120   : > { %v704_v49 = vpop.permute.xlu1 %703  ;;  %v386_v50 = vpop.permute.xlu0 %385 }
 0x124   : > { %v4201_v51 = vpop.permute.xlu1 %1041  ;;  %v873_v52 = vpop.permute.xlu0 %872 }
 0x128   : > { %v390_v54 = vpop.permute.xlu1 %389  ;;  %v4206_v55 = vpop.permute.xlu0 %1210 }
 0x129   : > { %3775 = vmatpush3.msk.msra.mxu1 %vm398_vm8, %v390_v54 }
 0x12a   : > { %3779 = vmatprep.subr.mxu1 %v4007_v0  ;;  %3777 = vmatmul.mubr.msk.f32.vlgmr.msra.gmra.mxu1 %vm394_vm9, %v3625_v53 }
 0x12b   : > { %3780 = vmatpush3.msk.msra.mxu1 %vm398_vm8, %v379_v38  ;;  %3781 = vmatprep.mubr.msk.f32.mxu1 %vm4024_vm7, %v4007_v0 }
 0x12c   : > { %v4217_v57 = vpop.permute.xlu1 %1379  ;;  %v388_v58 = vpop.permute.xlu0 %387  ;;  %3784 = vmatprep.subr.mxu1 %v4007_v0 }
 0x12d   : > { %v393_v59 = vsel %vm391_vm10, %v388_v58, %v390_v54  ;;  %v392_v60 = vsel %vm391_vm10, %v386_v50, %v388_v58 }
 0x12e   : > { %3626 = vmatprep.subr.msk.mxu0 %vm398_vm8, %v393_v59  ;;  %3782 = vmatmul.mubr.msk.f32.vlgmr.msra.gmra.mxu1 %vm394_vm9, %v377_v56 }
 0x12f   : > { %3627 = vmatpush1.msk.msra.mxu0 %vm398_vm8, %v392_v60  ;;  %3786 = vmatprep.mubr.msk.f32.mxu1 %vm4024_vm7, %v4007_v0 }
 0x130   : > { %v706_v61 = vpop.permute.xlu1 %705  ;;  %3628 = vmatmul.mubr.msk.f32.vlgmr.msra.gmra.mxu0 %vm394_vm9, %v3625_v53  ;;  %3631 = vmatprep.subr.msk.mxu0 %vm398_vm8, %v702_v39  ;;  %v4229_v62 = vpop.permute.xlu0 %1548 }
 0x131   : > { %3632 = vmatpush1.msk.msra.mxu0 %vm398_vm8, %v4162_v37  ;;  %619 = vmatprep.mubr.f32.mxu0 %v4007_v0  ;;  %v710_v4 = vsel %vm709_vm11, %v704_v49, %v706_v61 }
 0x134   : > { %v877_v1 = vpop.permute.xlu1 %876  ;;  %3633 = vmatmul.mubr.msk.f32.vlgmr.msra.gmra.mxu0 %vm394_vm9, %v377_v56  ;;  %v708_v2 = vpop.permute.xlu0 %707 }
 0x135   : > { %v711_v3 = vsel %vm709_vm11, %v706_v61, %v708_v2  ;;  %3785 = vmatpush3.msk.msra.mxu1 %vm398_vm8, %v708_v2  ;;  %785 = vmatprep.mubr.f32.mxu0 %v4007_v0 }
 0x136   : > { %3637 = vmatprep.subr.msk.mxu0 %vm398_vm8, %v711_v3  ;;  %3787 = vmatmul.mubr.msk.f32.vlgmr.msra.gmra.mxu1 %vm394_vm9, %v3636_v63 }
 0x137   : > { %3789 = vmatprep.subr.mxu1 %v4007_v0  ;;  %3638 = vmatpush1.msk.msra.mxu0 %vm398_vm8, %v710_v4 }
 0x138   : > { %3790 = vmatpush3.msk.msra.mxu1 %vm398_vm8, %v877_v1  ;;  %v1044_v6 = vpop.permute.xlu1 %1043  ;;  %3639 = vmatmul.mubr.msk.f32.vlgmr.msra.gmra.mxu0 %vm394_vm9, %v3636_v63  ;;  %v875_v7 = vpop.permute.xlu0 %874 }
 0x139   : > { %v879_v8 = vsel %vm878_vm12, %v873_v52, %v875_v7  ;;  %v880_v9 = vsel %vm878_vm12, %v875_v7, %v877_v1  ;;  %3791 = vmatprep.mubr.msk.f32.mxu1 %vm4024_vm7, %v4007_v0  ;;  %954 = vmatprep.mubr.f32.mxu0 %v4007_v0  ;;  %v1048_v14 = vsel %vm1047_vm13, %v4201_v51, %v1044_v6 }
 0x13a   : > { %3643 = vmatprep.subr.msk.mxu0 %vm398_vm8, %v880_v9  ;;  %3792 = vmatmul.mubr.msk.f32.vlgmr.msra.gmra.mxu1 %vm394_vm9, %v3642_v5 }
 0x13b   : > { %3644 = vmatpush1.msk.msra.mxu0 %vm398_vm8, %v879_v8  ;;  %3794 = vmatprep.subr.mxu1 %v4007_v0 }
 0x13c   : > { %v1215_v11 = vpop.permute.xlu1 %1214  ;;  %3645 = vmatmul.mubr.msk.f32.vlgmr.msra.gmra.mxu0 %vm394_vm9, %v3642_v5  ;;  %v1046_v12 = vpop.permute.xlu0 %1045  ;;  %3796 = vmatprep.mubr.msk.f32.mxu1 %vm4024_vm7, %v4007_v0 }
 0x13d   : > { %v1049_v13 = vsel %vm1047_vm13, %v1044_v6, %v1046_v12  ;;  %3795 = vmatpush3.msk.msra.mxu1 %vm398_vm8, %v1046_v12  ;;  %1123 = vmatprep.mubr.f32.mxu0 %v4007_v0 }
 0x13e   : > { %3649 = vmatprep.subr.msk.mxu0 %vm398_vm8, %v1049_v13  ;;  %3797 = vmatmul.mubr.msk.f32.vlgmr.msra.gmra.mxu1 %vm394_vm9, %v3648_v10 }
 0x13f   : > { %3799 = vmatprep.subr.mxu1 %v4007_v0  ;;  %3650 = vmatpush1.msk.msra.mxu0 %vm398_vm8, %v1048_v14 }
 0x140   : > { %3800 = vmatpush3.msk.msra.mxu1 %vm398_vm8, %v1215_v11  ;;  %v1382_v16 = vpop.permute.xlu1 %1381  ;;  %3651 = vmatmul.mubr.msk.f32.vlgmr.msra.gmra.mxu0 %vm394_vm9, %v3648_v10  ;;  %v1213_v17 = vpop.permute.xlu0 %1212 }
 0x141   : > { %v1217_v18 = vsel %vm1216_vm14, %v4206_v55, %v1213_v17  ;;  %v1218_v19 = vsel %vm1216_vm14, %v1213_v17, %v1215_v11  ;;  %3801 = vmatprep.mubr.msk.f32.mxu1 %vm4024_vm7, %v4007_v0  ;;  %1292 = vmatprep.mubr.f32.mxu0 %v4007_v0  ;;  %v1386_v24 = vsel %vm1385_vm15, %v4217_v57, %v1382_v16  ;;  %v1893_v11 = vlaneseq }
 0x142   : > { %3655 = vmatprep.subr.msk.mxu0 %vm398_vm8, %v1218_v19  ;;  %3802 = vmatmul.mubr.msk.f32.vlgmr.msra.gmra.mxu1 %vm394_vm9, %v3654_v15 }
 0x143   : > { %3656 = vmatpush1.msk.msra.mxu0 %vm398_vm8, %v1217_v18  ;;  %3804 = vmatprep.subr.mxu1 %v4007_v0 }
 0x144   : > { %v1553_v21 = vpop.permute.xlu1 %1552  ;;  %3657 = vmatmul.mubr.msk.f32.vlgmr.msra.gmra.mxu0 %vm394_vm9, %v3654_v15  ;;  %v1384_v22 = vpop.permute.xlu0 %1383  ;;  %3806 = vmatprep.mubr.msk.f32.mxu1 %vm4024_vm7, %v4007_v0 }
 0x145   : > { %v1387_v23 = vsel %vm1385_vm15, %v1382_v16, %v1384_v22  ;;  %3805 = vmatpush3.msk.msra.mxu1 %vm398_vm8, %v1384_v22  ;;  %1461 = vmatprep.mubr.f32.mxu0 %v4007_v0  ;;  %v1894_v22 = vshrl.u32 %v1893_v11, 7 }
 0x146   : > { %3661 = vmatprep.subr.msk.mxu0 %vm398_vm8, %v1387_v23  ;;  %3807 = vmatmul.mubr.msk.f32.vlgmr.msra.gmra.mxu1 %vm394_vm9, %v3660_v20 }
 0x147   : > { %3809 = vmatprep.subr.mxu1 %v4007_v0  ;;  %3662 = vmatpush1.msk.msra.mxu0 %vm398_vm8, %v1386_v24 }
 0x148   : > { %3810 = vmatpush3.msk.msra.mxu1 %vm398_vm8, %v1553_v21  ;;  %v1720_v26 = vpop.permute.xlu1 %1719  ;;  %3663 = vmatmul.mubr.msk.f32.vlgmr.msra.gmra.mxu0 %vm394_vm9, %v3660_v20  ;;  %v1551_v27 = vpop.permute.xlu0 %1550 }
 0x149   : > { %v1555_v28 = vsel %vm1554_vm0, %v4229_v62, %v1551_v27  ;;  %v1556_v29 = vsel %vm1554_vm0, %v1551_v27, %v1553_v21  ;;  %3811 = vmatprep.mubr.msk.f32.mxu1 %vm4024_vm7, %v4007_v0  ;;  %1630 = vmatprep.mubr.f32.mxu0 %v4007_v0 }
 0x14a   : > { %3667 = vmatprep.subr.msk.mxu0 %vm398_vm8, %v1556_v29  ;;  %3812 = vmatmul.mubr.msk.f32.vlgmr.msra.gmra.mxu1 %vm394_vm9, %v3666_v25 }
 0x14b   : > { %3668 = vmatpush1.msk.msra.mxu0 %vm398_vm8, %v1555_v28  ;;  %3814 = vmatprep.subr.mxu1 %v4007_v0  ;;  %v1895_v28 = vsub.s32 0, %v1894_v22 }
 0x14c   : > { %v1718_v31 = vpop.permute.xlu1 %1717  ;;  %3669 = vmatmul.mubr.msk.f32.vlgmr.msra.gmra.mxu0 %vm394_vm9, %v3666_v25  ;;  %v1722_v32 = vpop.permute.xlu0 %1721  ;;  %3816 = vmatprep.mubr.msk.f32.mxu1 %vm4024_vm7, %v4007_v0 }
 0x14d   : > { %v1724_v33 = vsel %vm1723_vm1, %v1718_v31, %v1720_v26  ;;  %v1725_v34 = vsel %vm1723_vm1, %v1720_v26, %v1722_v32  ;;  %3815 = vmatpush3.msk.msra.mxu1 %vm398_vm8, %v1722_v32  ;;  %1799 = vmatprep.mubr.f32.mxu0 %v4007_v0  ;;  %v1899_v32 = vsub.s32 1, %v1894_v22 }
 0x14e   : > { %3673 = vmatprep.subr.msk.mxu0 %vm398_vm8, %v1725_v34  ;;  %3817 = vmatmul.mubr.msk.f32.vlgmr.msra.gmra.mxu1 %vm394_vm9, %v3672_v30 }
 0x14f   : > { %3674 = vmatpush1.msk.msra.mxu0 %vm398_vm8, %v1724_v33  ;;  %3819 = vmatprep.subr.mxu1 %v4007_v0 }
 0x150   : > { %3675 = vmatmul.mubr.msk.f32.vlgmr.msra.gmra.mxu0 %vm394_vm9, %v3672_v30  ;;  %3821 = vmatprep.mubr.msk.f32.mxu1 %vm4024_vm7, %v4007_v0 }
 0x151   : > { %2020 = vmatprep.mubr.f32.mxu0 %v4007_v0 }
 0x159   : > { %v1883_v33 = vpop.permute.xlu0 %1882 }
 0x1ea   : > { %v542_v35 = vpop.f32.mrf.mxu1 }
 0x1ec   : > { %v3778_v36 = vpop.f32.mrf.mxu1 }
 0x1ee   : > { %v692_v37 = vpop.f32.mrf.mxu1 }
 0x1ef   : > { %v693_v52 = vadd.f32 %v692_v37, %v542_v35 }
 0x1f0   : > { %v471_v38 = vpop.f32.mrf.mxu0  ;;  %v3783_v39 = vpop.f32.mrf.mxu1 }
 0x1f2   : > { %v473_v40 = vpop.f32.mrf.mxu0 }
 0x1f4   : > { %v621_v41 = vpop.f32.mrf.mxu0 }
 0x1f5   : > { %v622_v57 = vadd.f32 %v621_v41, %v471_v38  ;;  %v1891_v38 = vld [vmem:[%s4596_s5] sm:$0x7] }
 0x1f6   : > { %v623_v42 = vpop.f32.mrf.mxu0  ;;  %v858_v43 = vpop.f32.mrf.mxu1  ;;  %v1900_v41 = vrot.slane %v1891_v38, %v1899_v32 }
 0x1f7   : > { %v864_v58 = vadd.f32 %v858_v43, %v693_v52  ;;  %v624_v61 = vadd.f32 %v623_v42, %v473_v40  ;;  %v1896_v42 = vrot.slane %v1891_v38, %v1895_v28 }
 0x1f8   : > { %v787_v44 = vpop.f32.mrf.mxu0  ;;  %v3788_v45 = vpop.f32.mrf.mxu1 }
 0x1f9   : > { %v862_v62 = vadd.f32 %v787_v44, %v622_v57  ;;  %v1903_v45 = vsub.s32 2, %v1894_v22 }
 0x1fa   : > { %v789_v46 = vpop.f32.mrf.mxu0  ;;  %v1027_v47 = vpop.f32.mrf.mxu1 }
 0x1fb   : > { %v863_v2 = vadd.f32 %v789_v46, %v624_v61  ;;  %v1033_v3 = vadd.f32 %v1027_v47, %v864_v58 }
 0x1fc   : > { %v956_v48 = vpop.f32.mrf.mxu0  ;;  %v3793_v49 = vpop.f32.mrf.mxu1 }
 0x1fd   : > { %v1031_v4 = vadd.f32 %v956_v48, %v862_v62 }
 0x1fe   : > { %v958_v50 = vpop.f32.mrf.mxu0  ;;  %v1196_v51 = vpop.f32.mrf.mxu1 }
 0x1ff   : > { %v1032_v7 = vadd.f32 %v958_v50, %v863_v2  ;;  %v1202_v12 = vadd.f32 %v1196_v51, %v1033_v3  ;;  %v1904_v50 = vrot.slane %v1891_v38, %v1903_v45 }
 0x200   : > { %v1125_v53 = vpop.f32.mrf.mxu0  ;;  %v3798_v54 = vpop.f32.mrf.mxu1 }
 0x201   : > { %v1200_v8 = vadd.f32 %v1125_v53, %v1031_v4  ;;  %v3423_v4 = vld [vmem:[%s4595_s4] sm:$0xf] }
 0x202   : > { %v1127_v55 = vpop.f32.mrf.mxu0  ;;  %v1365_v56 = vpop.f32.mrf.mxu1 }
 0x203   : > { %v1201_v13 = vadd.f32 %v1127_v55, %v1032_v7  ;;  %v1371_v17 = vadd.f32 %v1365_v56, %v1202_v12  ;;  %v3689_v12 = vld [vmem:[%s4594_s3 + $0x8] sm:$0xf] }
 0x204   : > { %v1294_v59 = vpop.f32.mrf.mxu0  ;;  %v3803_v60 = vpop.f32.mrf.mxu1 }
 0x205   : > { %v1369_v14 = vadd.f32 %v1294_v59, %v1200_v8 }
 0x206   : > { %v1296_v63 = vpop.f32.mrf.mxu0  ;;  %v1534_v1 = vpop.f32.mrf.mxu1 }
 0x207   : > { %v1370_v18 = vadd.f32 %v1296_v63, %v1201_v13  ;;  %v1540_v23 = vadd.f32 %v1534_v1, %v1371_v17 }
 0x208   : > { %v1463_v5 = vpop.f32.mrf.mxu0  ;;  %v3808_v6 = vpop.f32.mrf.mxu1 }
 0x209   : > { %v1538_v19 = vadd.f32 %v1463_v5, %v1369_v14  ;;  %v3678_v6 = vld [vmem:[%s4594_s3 + $0x4] sm:$0xf] }
 0x20a   : > { %v1465_v9 = vpop.f32.mrf.mxu0  ;;  %v1703_v10 = vpop.f32.mrf.mxu1 }
 0x20b   : > { %v1539_v24 = vadd.f32 %v1465_v9, %v1370_v18  ;;  %v1709_v29 = vadd.f32 %v1703_v10, %v1540_v23  ;;  %v1931_v9 = vld [vmem:[%s4594_s3] sm:$0xf]  ;;  %v3695_v18 = vld [vmem:[%s4594_s3 + $0xc] sm:$0xf]  ;;  %v3701_v23 = vld [vmem:[%s4594_s3 + $0x10] sm:$0xf] }
 0x20c   : > { %v1632_v15 = vpop.f32.mrf.mxu0  ;;  %v3813_v16 = vpop.f32.mrf.mxu1 }
 0x20d   : > { %v1707_v25 = vadd.f32 %v1632_v15, %v1538_v19 }
 0x20e   : > { %v1634_v20 = vpop.f32.mrf.mxu0  ;;  %v1872_v21 = vpop.f32.mrf.mxu1 }
 0x20f   : > { %v1708_v30 = vadd.f32 %v1634_v20, %v1539_v24  ;;  %v1878_v35 = vadd.f32 %v1872_v21, %v1709_v29 }
 0x210   : > { %v1801_v26 = vpop.f32.mrf.mxu0  ;;  %v3818_v27 = vpop.f32.mrf.mxu1 }
 0x211   : > { %v1876_v31 = vadd.f32 %v1801_v26, %v1707_v25  ;;  %v1887_v43 = vadd.f32 %v1883_v33, %v1878_v35  ;;  %v3707_v26 = vld [vmem:[%s4594_s3 + $0x14] sm:$0xf] }
 0x212   : > { %v1803_v34 = vpop.f32.mrf.mxu0 }
 0x213   : > { %v1885_v36 = vadd.f32 %v1883_v33, %v1876_v31  ;;  %v1877_v37 = vadd.f32 %v1803_v34, %v1708_v30  ;;  %v1890_v48 = vmax.f32 %v1887_v43, 0.0  ;;  %v3719_v43 = vld [vmem:[%s4594_s3 + $0x1c] sm:$0xf] }
 0x215   : > { %v1888_v39 = vmax.f32 %v1885_v36, 0.0  ;;  %v1886_v40 = vadd.f32 %v1883_v33, %v1877_v37  ;;  %v1910_v51 = vmul.f32 %v1904_v50, %v1890_v48  ;;  %v3713_v33 = vld [vmem:[%s4594_s3 + $0x18] sm:$0xf] }
 0x217   : > { %v1889_v44 = vmax.f32 %v1886_v40, 0.0  ;;  %v1908_v47 = vmul.f32 %v1896_v42, %v1888_v39 }
 0x219   : > { %v1909_v46 = vmul.f32 %v1900_v41, %v1889_v44 }
 0x21b   : > { %v1914_v49 = vcombine.low %v1908_v47, %v1909_v46 }
 0x21d   : > { %1915 = vrot.lane.b32.xlu1 %v1914_v49, %s4009_s15  ;;  %v3725_v49 = vld [vmem:[%s4594_s3 + $0x20] sm:$0xf] }
 0x221   : > { %1917 = vrot.lane.b32.xlu1 %v1910_v51, %s4009_s15  ;;  %s4034_s15 = smov 120  }
 0x28f   : > { %v1916_v52 = vpop.permute.xlu1 %1915 }
 0x290   : > { %v1919_v53 = vrot.slane %v1916_v52, 4 }
 0x292   : > { %v1921_v54 = vsel %vm1920_vm4, %v1919_v53, %v1916_v52 }
 0x293   : > { %1928 = vst.msk [vmem:[#allocation3] sm:$0xff] %vm1927_vm5, %v1921_v54  ;;  %v1918_v55 = vpop.permute.xlu1 %1917 }
 0x294   : > { %v1922_v56 = vsel %vm1920_vm4, %v1919_v53, %v1918_v55 }
 0x295   : > { %1930 = vst.msk [vmem:[#allocation3 + $0x8] sm:$0xf] %vm1929_vm6, %v1922_v56 }
 0x29a   : > { %v4343_v57 = vld [vmem:[#allocation3] sm:$0xff] }
 0x29b   : > { %1939 = vrot.lane.b32.xlu0 %v4343_v57, %s4026_s18  ;;  %v2253_v61 = vcombine.high %v4343_v57, %v4343_v57 }
 0x29c   : > { %v1933_v58 = vld [vmem:[#allocation3 + $0x8] sm:$0xf] }
 0x29d   : > { %1943 = vrot.lane.b32.xlu1 %v1933_v58, %s4026_s18  ;;  %v2250_v59 = vld [vmem:[#allocation3 + $0x8] sm:$0xf] }
 0x29e   : > { %v2418_v60 = vld [vmem:[#allocation3 + $0x8] sm:$0xf] }
 0x29f   : > { %2258 = vrot.lane.b32.xlu0 %v2250_v59, %s4025_s17  ;;  %v2586_v62 = vld [vmem:[#allocation3 + $0x8] sm:$0xf] }
 0x2a0   : > { %v2754_v63 = vld [vmem:[#allocation3 + $0x8] sm:$0xf] }
 0x2a1   : > { %2254 = vrot.lane.b32.xlu1 %v4343_v57, %s4025_s17  ;;  %v2922_v1 = vld [vmem:[#allocation3 + $0x8] sm:$0xf] }
 0x2a2   : > { %v3090_v2 = vld [vmem:[#allocation3 + $0x8] sm:$0xf] }
 0x2a3   : > { %2422 = vrot.lane.b32.xlu0 %v4343_v57, %s4028_s20  ;;  %v3258_v3 = vld [vmem:[#allocation3 + $0x8] sm:$0xf] }
 0x2a5   : > { %2426 = vrot.lane.b32.xlu1 %v2418_v60, %s4028_s20 }
 0x2a7   : > { %1941 = vrot.lane.b32.xlu0 %v2253_v61, %s4026_s18  ;;  %s4508_s18 = scalar_lea.vmem [#allocation4], %s3622_s11  ;;  %s4044_s11 = smov 116  }
 0x2a9   : > { %2590 = vrot.lane.b32.xlu1 %v4343_v57, %s4027_s19 }
 0x2ab   : > { %2594 = vrot.lane.b32.xlu0 %v2586_v62, %s4027_s19 }
 0x2ad   : > { %2256 = vrot.lane.b32.xlu1 %v2253_v61, %s4025_s17 }
 0x2af   : > { %2758 = vrot.lane.b32.xlu0 %v4343_v57, %s4029_s26 }
 0x2b1   : > { %2762 = vrot.lane.b32.xlu1 %v2754_v63, %s4029_s26 }
 0x2b3   : > { %2424 = vrot.lane.b32.xlu0 %v2253_v61, %s4028_s20 }
 0x2b5   : > { %2592 = vrot.lane.b32.xlu1 %v2253_v61, %s4027_s19  ;;  %s4035_s19 = smov 124  }
 0x2b7   : > { %2930 = vrot.lane.b32.xlu0 %v2922_v1, %s4030_s28 }
 0x2b9   : > { %2926 = vrot.lane.b32.xlu1 %v4343_v57, %s4030_s28 }
 0x2bb   : > { %2760 = vrot.lane.b32.xlu0 %v2253_v61, %s4029_s26 }
 0x2bd   : > { %2928 = vrot.lane.b32.xlu1 %v2253_v61, %s4030_s28  ;;  %s4036_s28 = smov 112  }
 0x2bf   : > { %3094 = vrot.lane.b32.xlu0 %v4343_v57, %s4031_s29 }
 0x2c1   : > { %3098 = vrot.lane.b32.xlu1 %v3090_v2, %s4031_s29 }
 0x2c3   : > { %3096 = vrot.lane.b32.xlu0 %v2253_v61, %s4031_s29  ;;  %s4037_s29 = smov 122  }
 0x2c5   : > { %3264 = vrot.lane.b32.xlu1 %v2253_v61, %s4033_s9 }
 0x2c7   : > { %3266 = vrot.lane.b32.xlu0 %v3258_v3, %s4033_s9 }
 0x2c9   : > { %3262 = vrot.lane.b32.xlu1 %v4343_v57, %s4033_s9  ;;  %s4038_s9 = smov 118  }
 0x2cb   : > { %3426 = vperm.xlu0 %3942, %v3423_v4  }
 0x30d   : > { %v1940_v5 = vpop.permute.xlu0 %1939 }
 0x30f   : > { %v1944_v7 = vpop.permute.xlu1 %1943 }
 0x310   : > { %3820 = vmatpush3.msk.msra.mxu1 %vm398_vm8, %v1944_v7 }
 0x311   : > { %v2259_v8 = vpop.permute.xlu0 %2258  ;;  %3822 = vmatmul.mubr.msk.f32.vlgmr.msra.gmra.mxu1 %vm394_vm9, %v3678_v6  ;;  %3824 = vmatprep.subr.mxu1 %v4007_v0 }
 0x312   : > { %3825 = vmatpush3.msk.msra.mxu1 %vm398_vm8, %v1933_v58  ;;  %3826 = vmatprep.mubr.msk.f32.mxu1 %vm4024_vm7, %v4007_v0 }
 0x313   : > { %v2255_v10 = vpop.permute.xlu1 %2254  ;;  %3829 = vmatprep.subr.mxu1 %v4007_v0 }
 0x315   : > { %v2423_v11 = vpop.permute.xlu0 %2422  ;;  %3827 = vmatmul.mubr.msk.f32.vlgmr.msra.gmra.mxu1 %vm394_vm9, %v1931_v9 }
 0x316   : > { %3830 = vmatpush3.msk.msra.mxu1 %vm398_vm8, %v2259_v8  ;;  %3831 = vmatprep.mubr.msk.f32.mxu1 %vm4024_vm7, %v4007_v0 }
 0x317   : > { %v2427_v13 = vpop.permute.xlu1 %2426  ;;  %3834 = vmatprep.subr.mxu1 %v4007_v0 }
 0x319   : > { %v1942_v14 = vpop.permute.xlu0 %1941  ;;  %3832 = vmatmul.mubr.msk.f32.vlgmr.msra.gmra.mxu1 %vm394_vm9, %v3689_v12 }
 0x31a   : > { %v1945_v15 = vsel %vm391_vm10, %v1940_v5, %v1942_v14  ;;  %v1946_v16 = vsel %vm391_vm10, %v1942_v14, %v1944_v7  ;;  %3835 = vmatpush3.msk.msra.mxu1 %vm398_vm8, %v2427_v13  ;;  %3836 = vmatprep.mubr.msk.f32.mxu1 %vm4024_vm7, %v4007_v0  ;;  %vm3456_vm10 = vcmask 519552  }
 0x31b   : > { %3679 = vmatprep.subr.msk.mxu0 %vm398_vm8, %v1946_v16  ;;  %v2591_v17 = vpop.permute.xlu1 %2590  ;;  %3839 = vmatprep.subr.mxu1 %v4007_v0 }
 0x31c   : > { %3680 = vmatpush1.msk.msra.mxu0 %vm398_vm8, %v1945_v15 }
 0x31d   : > { %v2595_v19 = vpop.permute.xlu0 %2594  ;;  %3681 = vmatmul.mubr.msk.f32.vlgmr.msra.gmra.mxu0 %vm394_vm9, %v3678_v6  ;;  %3684 = vmatprep.subr.msk.mxu0 %vm398_vm8, %v2253_v61 }
 0x31e   : > { %3685 = vmatpush1.msk.msra.mxu0 %vm398_vm8, %v4343_v57  ;;  %3837 = vmatmul.mubr.msk.f32.vlgmr.msra.gmra.mxu1 %vm394_vm9, %v3695_v18 }
 0x31f   : > { %3840 = vmatpush3.msk.msra.mxu1 %vm398_vm8, %v2595_v19  ;;  %v2257_v20 = vpop.permute.xlu1 %2256  ;;  %2170 = vmatprep.mubr.f32.mxu0 %v4007_v0 }
 0x320   : > { %v2260_v21 = vsel %vm709_vm11, %v2255_v10, %v2257_v20  ;;  %v2261_v22 = vsel %vm709_vm11, %v2257_v20, %v2259_v8  ;;  %3841 = vmatprep.mubr.msk.f32.mxu1 %vm4024_vm7, %v4007_v0  ;;  %3844 = vmatprep.subr.mxu1 %v4007_v0  ;;  %vm3463_vm11 = vcmask 650752  }
 0x321   : > { %v2759_v24 = vpop.permute.xlu0 %2758  ;;  %3686 = vmatmul.mubr.msk.f32.vlgmr.msra.gmra.mxu0 %vm394_vm9, %v1931_v9  ;;  %3690 = vmatprep.subr.msk.mxu0 %vm398_vm8, %v2261_v22 }
 0x322   : > { %3691 = vmatpush1.msk.msra.mxu0 %vm398_vm8, %v2260_v21  ;;  %2335 = vmatprep.mubr.f32.mxu0 %v4007_v0 }
 0x323   : > { %v2763_v25 = vpop.permute.xlu1 %2762  ;;  %3842 = vmatmul.mubr.msk.f32.vlgmr.msra.gmra.mxu1 %vm394_vm9, %v3701_v23 }
 0x324   : > { %3845 = vmatpush3.msk.msra.mxu1 %vm398_vm8, %v2763_v25  ;;  %3846 = vmatprep.mubr.msk.f32.mxu1 %vm4024_vm7, %v4007_v0 }
 0x325   : > { %v2425_v27 = vpop.permute.xlu0 %2424  ;;  %3692 = vmatmul.mubr.msk.f32.vlgmr.msra.gmra.mxu0 %vm394_vm9, %v3689_v12  ;;  %3849 = vmatprep.subr.mxu1 %v4007_v0 }
 0x326   : > { %v2428_v28 = vsel %vm878_vm12, %v2423_v11, %v2425_v27  ;;  %v2429_v29 = vsel %vm878_vm12, %v2425_v27, %v2427_v13  ;;  %2503 = vmatprep.mubr.f32.mxu0 %v4007_v0  ;;  %vm3470_vm12 = vcmask 781952  }
 0x327   : > { %3696 = vmatprep.subr.msk.mxu0 %vm398_vm8, %v2429_v29  ;;  %v2593_v30 = vpop.permute.xlu1 %2592  ;;  %3847 = vmatmul.mubr.msk.f32.vlgmr.msra.gmra.mxu1 %vm394_vm9, %v3707_v26 }
 0x328   : > { %v2596_v31 = vsel %vm1047_vm13, %v2591_v17, %v2593_v30  ;;  %v2597_v32 = vsel %vm1047_vm13, %v2593_v30, %v2595_v19  ;;  %3697 = vmatpush1.msk.msra.mxu0 %vm398_vm8, %v2428_v28  ;;  %3851 = vmatprep.mubr.msk.f32.mxu1 %vm4024_vm7, %v4007_v0  ;;  %vm3533_vm13 = vcmask 818176  }
 0x329   : > { %v2931_v34 = vpop.permute.xlu0 %2930  ;;  %3698 = vmatmul.mubr.msk.f32.vlgmr.msra.gmra.mxu0 %vm394_vm9, %v3695_v18  ;;  %3702 = vmatprep.subr.msk.mxu0 %vm398_vm8, %v2597_v32 }
 0x32a   : > { %3703 = vmatpush1.msk.msra.mxu0 %vm398_vm8, %v2596_v31  ;;  %3850 = vmatpush3.msk.msra.mxu1 %vm398_vm8, %v2931_v34 }
 0x32b   : > { %v2927_v35 = vpop.permute.xlu1 %2926  ;;  %2671 = vmatprep.mubr.f32.mxu0 %v4007_v0  ;;  %3852 = vmatmul.mubr.msk.f32.vlgmr.msra.gmra.mxu1 %vm394_vm9, %v3713_v33 }
 0x32c   : > { %3854 = vmatprep.subr.mxu1 %v4007_v0  ;;  %3856 = vmatprep.mubr.msk.f32.mxu1 %vm4024_vm7, %v4007_v0 }
 0x32d   : > { %v2761_v36 = vpop.permute.xlu0 %2760  ;;  %3704 = vmatmul.mubr.msk.f32.vlgmr.msra.gmra.mxu0 %vm394_vm9, %v3701_v23 }
 0x32e   : > { %v2764_v37 = vsel %vm1216_vm14, %v2759_v24, %v2761_v36  ;;  %v2765_v38 = vsel %vm1216_vm14, %v2761_v36, %v2763_v25  ;;  %2839 = vmatprep.mubr.f32.mxu0 %v4007_v0  ;;  %vm3485_vm14 = vcmask 932864  }
 0x32f   : > { %3708 = vmatprep.subr.msk.mxu0 %vm398_vm8, %v2765_v38  ;;  %v2929_v39 = vpop.permute.xlu1 %2928 }
 0x330   : > { %v2932_v40 = vsel %vm1385_vm15, %v2927_v35, %v2929_v39  ;;  %v2933_v41 = vsel %vm1385_vm15, %v2929_v39, %v2931_v34  ;;  %3709 = vmatpush1.msk.msra.mxu0 %vm398_vm8, %v2764_v37  ;;  %vm3477_vm15 = vcmask 913152  }
 0x331   : > { %v3095_v42 = vpop.permute.xlu0 %3094  ;;  %3710 = vmatmul.mubr.msk.f32.vlgmr.msra.gmra.mxu0 %vm394_vm9, %v3707_v26  ;;  %3714 = vmatprep.subr.msk.mxu0 %vm398_vm8, %v2933_v41 }
 0x332   : > { %3715 = vmatpush1.msk.msra.mxu0 %vm398_vm8, %v2932_v40  ;;  %3007 = vmatprep.mubr.f32.mxu0 %v4007_v0 }
 0x333   : > { %v3099_v44 = vpop.permute.xlu1 %3098 }
 0x334   : > { %3855 = vmatpush3.msk.msra.mxu1 %vm398_vm8, %v3099_v44 }
 0x335   : > { %v3097_v45 = vpop.permute.xlu0 %3096  ;;  %3716 = vmatmul.mubr.msk.f32.vlgmr.msra.gmra.mxu0 %vm394_vm9, %v3713_v33  ;;  %3857 = vmatmul.mubr.msk.f32.vlgmr.msra.gmra.mxu1 %vm394_vm9, %v3719_v43 }
 0x336   : > { %v3100_v46 = vsel %vm1554_vm0, %v3095_v42, %v3097_v45  ;;  %v3101_v47 = vsel %vm1554_vm0, %v3097_v45, %v3099_v44  ;;  %3175 = vmatprep.mubr.f32.mxu0 %v4007_v0  ;;  %3859 = vmatprep.subr.mxu1 %v4007_v0  ;;  %vm3489_vm0 = vcmask 1044352  }
 0x337   : > { %3720 = vmatprep.subr.msk.mxu0 %vm398_vm8, %v3101_v47  ;;  %v3265_v48 = vpop.permute.xlu1 %3264  ;;  %3861 = vmatprep.mubr.msk.f32.mxu1 %vm4024_vm7, %v4007_v0  ;;  %v3432_v47 = vld [vmem:[%s4139_s13] sm:$0xf]  ;;  %vm3434_vm7 = vcmask 125952  }
 0x338   : > { %3721 = vmatpush1.msk.msra.mxu0 %vm398_vm8, %v3100_v46 }
 0x339   : > { %v3267_v50 = vpop.permute.xlu0 %3266  ;;  %3722 = vmatmul.mubr.msk.f32.vlgmr.msra.gmra.mxu0 %vm394_vm9, %v3719_v43 }
 0x33a   : > { %v3269_v51 = vsel %vm1723_vm1, %v3265_v48, %v3267_v50  ;;  %3860 = vmatpush3.msk.msra.mxu1 %vm398_vm8, %v3267_v50  ;;  %3343 = vmatprep.mubr.f32.mxu0 %v4007_v0 }
 0x33b   : > { %3726 = vmatprep.subr.msk.mxu0 %vm398_vm8, %v3269_v51  ;;  %3862 = vmatmul.mubr.msk.f32.vlgmr.msra.gmra.mxu1 %vm394_vm9, %v3725_v49  ;;  %v3263_v52 = vpop.permute.xlu1 %3262 }
 0x33c   : > { %v3268_v53 = vsel %vm1723_vm1, %v3263_v52, %v3265_v48 }
 0x33d   : > { %3727 = vmatpush1.msk.msra.mxu0 %vm398_vm8, %v3268_v53  ;;  %vm3442_vm8 = vcmask 257152  }
 0x33e   : > { %3728 = vmatmul.mubr.msk.f32.vlgmr.msra.gmra.mxu0 %vm394_vm9, %v3725_v49  ;;  %vm3449_vm9 = vcmask 388352  }
 0x346   : > { %v3427_v45 = vpop.permute.xlu0 %3426 }
 0x3d1   : > { %v2093_v54 = vpop.f32.mrf.mxu1 }
 0x3d3   : > { %v3823_v55 = vpop.f32.mrf.mxu1 }
 0x3d5   : > { %v2243_v56 = vpop.f32.mrf.mxu1 }
 0x3d6   : > { %v2244_v13 = vadd.f32 %v2243_v56, %v2093_v54 }
 0x3d7   : > { %v3828_v57 = vpop.f32.mrf.mxu1 }
 0x3d9   : > { %v2408_v58 = vpop.f32.mrf.mxu1 }
 0x3da   : > { %v2414_v18 = vadd.f32 %v2408_v58, %v2244_v13  ;;  %v3436_v58 = vld [vmem:[%s4139_s13] sm:$0xf]  ;;  %v3503_v13 = vld [vmem:[%s4139_s13 + $0x4] sm:$0xf] }
 0x3db   : > { %v3833_v59 = vpop.f32.mrf.mxu1 }
 0x3dd   : > { %v2022_v60 = vpop.f32.mrf.mxu0 }
 0x3de   : > { %v2576_v61 = vpop.f32.mrf.mxu1 }
 0x3df   : > { %v2024_v0 = vpop.f32.mrf.mxu0  ;;  %v2582_v25 = vadd.f32 %v2576_v61, %v2414_v18  ;;  %v3509_v18 = vld [vmem:[%s4139_s13 + $0x4] sm:$0xf] }
 0x3e0   : > { %v3838_v62 = vpop.f32.mrf.mxu1 }
 0x3e1   : > { %v2172_v63 = vpop.f32.mrf.mxu0  ;;  %v3491_v62 = vld [vmem:[%s4139_s13 + $0x4] sm:$0xf] }
 0x3e2   : > { %v2173_v15 = vadd.f32 %v2172_v63, %v2022_v60 }
 0x3e3   : > { %v2174_v1 = vpop.f32.mrf.mxu0  ;;  %v2744_v2 = vpop.f32.mrf.mxu1 }
 0x3e4   : > { %v2175_v17 = vadd.f32 %v2174_v1, %v2024_v0  ;;  %v2750_v33 = vadd.f32 %v2744_v2, %v2582_v25  ;;  %v3444_v0 = vld [vmem:[%s4139_s13] sm:$0xf] }
 0x3e5   : > { %v2337_v3 = vpop.f32.mrf.mxu0  ;;  %v3843_v4 = vpop.f32.mrf.mxu1 }
 0x3e6   : > { %v2412_v19 = vadd.f32 %v2337_v3, %v2173_v15  ;;  %v3451_v4 = vld [vmem:[%s4139_s13] sm:$0xf] }
 0x3e7   : > { %v2339_v5 = vpop.f32.mrf.mxu0  ;;  %v2912_v6 = vpop.f32.mrf.mxu1 }
 0x3e8   : > { %v2413_v21 = vadd.f32 %v2339_v5, %v2175_v17  ;;  %v2918_v42 = vadd.f32 %v2912_v6, %v2750_v33  ;;  %v3497_v5 = vld [vmem:[%s4139_s13 + $0x4] sm:$0xf]  ;;  %v3458_v6 = vld [vmem:[%s4139_s13] sm:$0xf] }
 0x3e9   : > { %v2505_v7 = vpop.f32.mrf.mxu0  ;;  %v3848_v8 = vpop.f32.mrf.mxu1 }
 0x3ea   : > { %v2580_v22 = vadd.f32 %v2505_v7, %v2412_v19 }
 0x3eb   : > { %v2507_v9 = vpop.f32.mrf.mxu0  ;;  %v3080_v10 = vpop.f32.mrf.mxu1 }
 0x3ec   : > { %v2581_v26 = vadd.f32 %v2507_v9, %v2413_v21  ;;  %v3086_v50 = vadd.f32 %v3080_v10, %v2918_v42 }
 0x3ed   : > { %v2673_v11 = vpop.f32.mrf.mxu0  ;;  %v3853_v12 = vpop.f32.mrf.mxu1 }
 0x3ee   : > { %v2748_v27 = vadd.f32 %v2673_v11, %v2580_v22  ;;  %v3465_v12 = vld [vmem:[%s4139_s13] sm:$0xf]  ;;  %v3515_v22 = vld [vmem:[%s4139_s13 + $0x4] sm:$0xf] }
 0x3ef   : > { %v2675_v14 = vpop.f32.mrf.mxu0 }
 0x3f0   : > { %v2749_v30 = vadd.f32 %v2675_v14, %v2581_v26 }
 0x3f1   : > { %v2841_v16 = vpop.f32.mrf.mxu0 }
 0x3f2   : > { %v2916_v31 = vadd.f32 %v2841_v16, %v2748_v27 }
 0x3f3   : > { %v2843_v20 = vpop.f32.mrf.mxu0 }
 0x3f4   : > { %v2917_v34 = vadd.f32 %v2843_v20, %v2749_v30  ;;  %v3527_v30 = vld [vmem:[%s4139_s13 + $0x4] sm:$0xf] }
 0x3f5   : > { %v3009_v23 = vpop.f32.mrf.mxu0  ;;  %v3248_v24 = vpop.f32.mrf.mxu1 }
 0x3f6   : > { %v3084_v35 = vadd.f32 %v3009_v23, %v2916_v31  ;;  %v3254_v53 = vadd.f32 %v3248_v24, %v3086_v50 }
 0x3f7   : > { %v3011_v28 = vpop.f32.mrf.mxu0  ;;  %v3858_v29 = vpop.f32.mrf.mxu1 }
 0x3f8   : > { %v3085_v38 = vadd.f32 %v3011_v28, %v2917_v34  ;;  %v3521_v28 = vld [vmem:[%s4139_s13 + $0x4] sm:$0xf]  ;;  %v3472_v29 = vld [vmem:[%s4139_s13] sm:$0xf] }
 0x3f9   : > { %v3177_v32 = vpop.f32.mrf.mxu0 }
 0x3fa   : > { %v3252_v39 = vadd.f32 %v3177_v32, %v3084_v35  ;;  %v3479_v32 = vld [vmem:[%s4139_s13] sm:$0xf] }
 0x3fb   : > { %v3179_v36 = vpop.f32.mrf.mxu0  ;;  %v3416_v37 = vpop.f32.mrf.mxu1 }
 0x3fc   : > { %v3253_v43 = vadd.f32 %v3179_v36, %v3085_v38  ;;  %v3422_v54 = vadd.f32 %v3416_v37, %v3254_v53 }
 0x3fd   : > { %v3863_v40 = vpop.f32.mrf.mxu1 }
 0x3fe   : > { %v3345_v41 = vpop.f32.mrf.mxu0  ;;  %v3431_v55 = vadd.f32 %v3427_v45, %v3422_v54  ;;  %v3538_v40 = vld [vmem:[%s4139_s13 + $0x4] sm:$0xf] }
 0x3ff   : > { %v3420_v44 = vadd.f32 %v3345_v41, %v3252_v39 }
 0x400   : > { %v3347_v46 = vpop.f32.mrf.mxu0 }
 0x401   : > { %v3429_v48 = vadd.f32 %v3427_v45, %v3420_v44  ;;  %v3421_v49 = vadd.f32 %v3347_v46, %v3253_v43 }
 0x403   : > { %3459 = vrot.lane.b32.xlu1 %v3429_v48, %s4034_s15  ;;  %3438 = vrot.lane.b32.xlu0 %v3429_v48, %s4025_s17  ;;  %v3433_v51 = vadd.f32 %v3432_v47, %v3429_v48  ;;  %v3430_v52 = vadd.f32 %v3427_v45, %v3421_v49  ;;  %s4039_s17 = smov 106   ;;  %s3737_s15 = sshll.u32 %s4103_s25, 7 }
 0x404   : > { %s4046_s25 = smov [#allocation4]  }
 0x405   : > { %3435 = vst.msk [vmem:[%s4508_s18] sm:$0xf] %vm3434_vm7, %v3433_v51  ;;  %v3529_v56 = vcombine.low %v3430_v52, %v3431_v55  ;;  %v3481_v57 = vcombine.low %v3429_v48, %v3430_v52  ;;  %s3949_s13 = sshll.u32 %s4046_s25, 4  ;;  %s3950_s13 = int_to_ptr.vmem [resolvable:$false] %s3949_s13 }
 0x407   : > { %3445 = vrot.lane.b32.xlu0 %v3429_v48, %s4035_s19  ;;  %3492 = vrot.lane.b32.xlu1 %v3430_v52, %s4036_s28  ;;  %s3559_s19 = sshll.u32 %s4508_s18, 4  ;;  %s3560_s19 = int_to_ptr.vmem [resolvable:$true] %s3559_s19 }
 0x408   : > { %p3952_p0 = scmp.lt.s32.totalorder %s3560_s19, %s3950_s13 }
 0x40b   : > { %3452 = vrot.lane.b32.xlu0 %v3429_v48, %s4037_s29  ;;  %3498 = vrot.lane.b32.xlu1 %v3430_v52, %s4028_s20  ;;  %s4043_s20 = smov 102  }
 0x40f   : > { %3466 = vrot.lane.b32.xlu0 %v3429_v48, %s4038_s9  ;;  %3504 = vrot.lane.b32.xlu1 %v3430_v52, %s4029_s26  ;;  %s4045_s26 = smov 98   ;;  %s3557_s9 = scalar_lea.hbm %s4597_s6, %s3737_s15 }
 0x413   : > { %3510 = vrot.lane.b32.xlu1 %v3430_v52, %s4039_s17  ;;  %3530 = vrot.lane.b32.xlu0 %v3529_v56, %s4040_s12  ;;  %s3545_s17 = scalar_lea.sflag [#allocation5], %s242_s10  ;;  %s3945_s12 = scalar_lea.vmem %s3560_s19, 128 }
 0x414   : > { %p3946_p11 = scmp.ne.s32.totalorder %s3560_s19, %s3945_s12 }
 0x416   : > { %p3947_p12 = pnand %p3946_p11, %p4120_p5 }
 0x417   : > { %3516 = vrot.lane.b32.xlu1 %v3430_v52, %s4041_s14  ;;  %3482 = vrot.lane.b32.xlu0 %v3481_v57, %s4042_s16  ;;  %s3951_s14 = scalar_lea.vmem %s3950_s13, 256 }
 0x418   : > { %p3948_p13 = pneg %p3947_p12  ;;  %p3953_p1 = scmp.lt.s32.totalorder %s3951_s14, %s3945_s12 }
 0x41a   : > { %p3954_p2 = por %p3953_p1, %p3952_p0 }
 0x41b   : > { %3522 = vrot.lane.b32.xlu1 %v3430_v52, %s4043_s20  ;;  %3473 = vrot.lane.b32.xlu0 %v3429_v48, %s4044_s11 }
 0x41c   : > { %p3955_p3 = pnand %p3954_p2, %p3948_p13 }
 0x41f   : > { %3539 = vrot.lane.b32.xlu1 %v3431_v55, %s4045_s26 }
 0x475   : > { %v3460_v59 = vpop.permute.xlu1 %3459  ;;  %v3439_v60 = vpop.permute.xlu0 %3438 }
 0x476   : > { %v3441_v61 = vadd.f32 %v3439_v60, %v3436_v58  ;;  %v3462_v11 = vadd.f32 %v3460_v59, %v3458_v6 }
 0x478   : > { %3443 = vst.msk [vmem:[%s4508_s18] sm:$0xf] %vm3442_vm8, %v3441_v61 }
 0x479   : > { %v3446_v63 = vpop.permute.xlu0 %3445  ;;  %v3493_v1 = vpop.permute.xlu1 %3492 }
 0x47a   : > { %v3448_v2 = vadd.f32 %v3446_v63, %v3444_v0  ;;  %v3495_v3 = vadd.f32 %v3493_v1, %v3491_v62 }
 0x47c   : > { %3496 = vst.msk [vmem:[%s4508_s18 + $0x4] sm:$0xf] %vm3434_vm7, %v3495_v3 }
 0x47d   : > { %3450 = vst.msk [vmem:[%s4508_s18] sm:$0xf] %vm3449_vm9, %v3448_v2  ;;  %v3453_v7 = vpop.permute.xlu0 %3452  ;;  %v3499_v8 = vpop.permute.xlu1 %3498 }
 0x47e   : > { %v3455_v9 = vadd.f32 %v3453_v7, %v3451_v4  ;;  %v3501_v10 = vadd.f32 %v3499_v8, %v3497_v5 }
 0x480   : > { %3457 = vst.msk [vmem:[%s4508_s18] sm:$0xf] %vm3456_vm10, %v3455_v9 }
 0x481   : > { %3502 = vst.msk [vmem:[%s4508_s18 + $0x4] sm:$0xf] %vm3442_vm8, %v3501_v10  ;;  %v3467_v14 = vpop.permute.xlu0 %3466  ;;  %v3505_v15 = vpop.permute.xlu1 %3504 }
 0x482   : > { %3464 = vst.msk [vmem:[%s4508_s18] sm:$0xf] %vm3463_vm11, %v3462_v11  ;;  %v3469_v16 = vadd.f32 %v3467_v14, %v3465_v12  ;;  %v3507_v17 = vadd.f32 %v3505_v15, %v3503_v13 }
 0x484   : > { %3471 = vst.msk [vmem:[%s4508_s18] sm:$0xf] %vm3470_vm12, %v3469_v16 }
 0x485   : > { %3508 = vst.msk [vmem:[%s4508_s18 + $0x4] sm:$0xf] %vm3449_vm9, %v3507_v17  ;;  %v3511_v19 = vpop.permute.xlu1 %3510  ;;  %v3531_v20 = vpop.permute.xlu0 %3530 }
 0x486   : > { %v3513_v21 = vadd.f32 %v3511_v19, %v3509_v18  ;;  %v3532_v23 = vrot.slane %v3531_v20, 4 }
 0x488   : > { %3514 = vst.msk [vmem:[%s4508_s18 + $0x4] sm:$0xf] %vm3456_vm10, %v3513_v21  ;;  %v3534_v31 = vsel %vm3533_vm13, %v3531_v20, %v3532_v23 }
 0x489   : > { %v3517_v24 = vpop.permute.xlu1 %3516  ;;  %v3483_v25 = vpop.permute.xlu0 %3482  ;;  %v3536_v38 = vadd.f32 %v3534_v31, %v3527_v30 }
 0x48a   : > { %v3519_v26 = vadd.f32 %v3517_v24, %v3515_v22  ;;  %v3484_v27 = vrot.slane %v3483_v25, 4 }
 0x48c   : > { %3520 = vst.msk [vmem:[%s4508_s18 + $0x4] sm:$0xf] %vm3463_vm11, %v3519_v26  ;;  %v3486_v33 = vsel %vm3485_vm14, %v3483_v25, %v3484_v27 }
 0x48d   : > { %v3523_v34 = vpop.permute.xlu1 %3522  ;;  %v3474_v35 = vpop.permute.xlu0 %3473  ;;  %v3488_v39 = vadd.f32 %v3486_v33, %v3479_v32 }
 0x48e   : > { %v3525_v36 = vadd.f32 %v3523_v34, %v3521_v28  ;;  %v3476_v37 = vadd.f32 %v3474_v35, %v3472_v29 }
 0x490   : > { %3526 = vst.msk [vmem:[%s4508_s18 + $0x4] sm:$0xf] %vm3470_vm12, %v3525_v36 }
 0x491   : > { %3478 = vst.msk [vmem:[%s4508_s18] sm:$0xf] %vm3477_vm15, %v3476_v37  ;;  %3537 = vst.msk [vmem:[%s4508_s18 + $0x4] sm:$0xf] %vm3477_vm15, %v3536_v38  ;;  %v3540_v41 = vpop.permute.xlu1 %3539 }
 0x492   : > { %3490 = vst.msk [vmem:[%s4508_s18] sm:$0xf] %vm3489_vm0, %v3488_v39  ;;  %v3542_v42 = vadd.f32 %v3540_v41, %v3538_v40 }
 0x494   : > { %3543 = vst.msk [vmem:[%s4508_s18 + $0x4] sm:$0xf] %vm3489_vm0, %v3542_v42 }
 0x495   : > { %3958 = shalt.err (!%p3955_p3)
}
 0x496   : > { %s3959_s16 = scalar_lea.hbm %s3557_s9, 128  ;;  %s3963_s20 = scalar_lea.hbm %s4597_s6, 256 }
 0x497   : > { %p3960_p4 = scmp.ne.s32.totalorder %s3557_s9, %s3959_s16  ;;  %p3964_p9 = scmp.lt.s32.totalorder %s3557_s9, %s4597_s6 }
 0x498   : > { %p3965_p10 = scmp.lt.s32.totalorder %s3963_s20, %s3959_s16 }
 0x499   : > { %p3961_p7 = pnand %p3960_p4, %p4120_p5 }
 0x49a   : > { %p3966_p11 = por %p3965_p10, %p3964_p9 }
 0x49b   : > { %p3962_p8 = pneg %p3961_p7 }
 0x49d   : > { %p3967_p12 = pnand %p3966_p11, %p3962_p8 }
 0x49f   : > { %3970 = shalt.err (!%p3967_p12)
}
 0x4a0   : > { %3864 = dma.vmem_to_hbm [thread:$0]  (%p4120_p5), %s3560_s19, 128, %s3557_s9, %s3545_s17  }
 0x4a1 PF: > { %p3870_p13 = scmp.ge.s32.totalorder %s4005_s24, 2  ;;  %s3571_s15 = sand.u32 1, %s3993_s21  }
 0x4a2   : > { %s3572_s28 = scalar_lea.sflag [#allocation5], %s3571_s15 }
 0x4a3   : > { %p3867_p0 = pnand %p3870_p13, %p4124_p6 }
 0x4a5   : > { %p3868_p1 = pneg %p3867_p0 }
 0x4a7   : > { %3988 = dma.done.wait (%p3868_p1), %s3572_s28, 128  }
 0x4a8   : > { %3990 = vsyncadd (%p3868_p1), %s3572_s28, 4294967168  ;;  %p16_p2 = scmp.ge.s32.totalorder %s4107_s27, 4   ;;  %s4600_s21 = smov %s3997_s22 }
 0x4a9   : > { %s4601_s22 = smov %s4001_s23  ;;  %s4602_s23 = smov %s4118_s30 }
 0x4aa   : > { %s4603_s24 = smov %s4107_s27  ;;  %18 = sbr.rel (!%p16_p2) target bundleno = 3 (0x3), region = 95 }
 0x4af   :  { %3577 = vsyncpa [#allocation5], 1 }
 0x4b0   :  { %3579 = vsyncpa [#allocation5 + $0x1], 1 }

</bundles_post_ra>
